<compile_context>
chip_gen: v7x
topology: tpu7x:2x2x1
jax: 0.10.0
libtpu: 0.0.40
codegen_flags: <defaults>
</compile_context>

<pallas_src>
import functools

import jax
import jax.numpy as jnp
import numpy as np
from jax.experimental import pallas as pl
from jax.experimental.pallas import tpu as pltpu


# ---------------------------------------------------------------------------
# Kernel 1: row-tiled  y = x @ W + b.  Used once, for the hoisted input
# projection with all three gates fused along N = 3H (x is read exactly once).
# ---------------------------------------------------------------------------
def _matmul_bias_kernel(x_ref, w_ref, b_ref, o_ref):
    o_ref[...] = (
        jnp.dot(x_ref[...], w_ref[...], preferred_element_type=jnp.float32)
        + b_ref[...]
    ).astype(o_ref.dtype)


def _matmul_bias(x2d, w, b):
    M, K = x2d.shape
    N = w.shape[1]
    # 512+ row tiles sit near the HBM roofline; full-M block when M is small.
    tm = M if M <= 1024 else 512
    return pl.pallas_call(
        _matmul_bias_kernel,
        out_shape=jax.ShapeDtypeStruct((M, N), jnp.float32),
        grid_spec=pltpu.PrefetchScalarGridSpec(
            num_scalar_prefetch=0,
            grid=(pl.cdiv(M, tm),),
            in_specs=[
                pl.BlockSpec((tm, K), lambda i: (i, 0)),
                pl.BlockSpec((K, N), lambda i: (0, 0)),
                pl.BlockSpec((1, N), lambda i: (0, 0)),
            ],
            out_specs=pl.BlockSpec((tm, N), lambda i: (i, 0)),
        ),
        compiler_params=pltpu.CompilerParams(dimension_semantics=("parallel",)),
    )(x2d, w, b)


# ---------------------------------------------------------------------------
# Kernel 2: GRU recurrence + fused output head.
#   grid = (batch_tiles [parallel], time_blocks [arbitrary]).
#   Per timestep: ONE MXU dot (TB,H)x(H,3H), gate math on VPU/EUP, hs store.
#   Per block epilogue: q = hs_block @ W_out + b_out (off the serial path,
#   reuses the hs block already sitting in VMEM).
# ---------------------------------------------------------------------------
def _gru_head_kernel(gi_ref, mask_ref, h0_ref, whh_ref, bhn_ref,
                     wout_ref, bout_ref, hs_ref, q_ref, h_scratch,
                     *, t_blk, hdim):
    # (Re)load the initial hidden state at the start of each batch tile's time
    # sweep (time is the innermost, "arbitrary" grid axis).
    @pl.when(pl.program_id(1) == 0)
    def _():
        h_scratch[...] = h0_ref[...]

    def step(i, h):
        # Single fused recurrent matmul; weight ref is read inside the step so
        # its live range does not span the unrolled loop (no vreg pinning).
        gh = jnp.dot(h, whh_ref[...], preferred_element_type=jnp.float32)
        gi = gi_ref[i]                                       # (TB, 3H)
        # r and z share one tanh call over 2H lanes: sigmoid(x)=0.5*(1+tanh(x/2)).
        rz = 0.5 * (jnp.tanh(0.5 * (gi[:, :2 * hdim] + gh[:, :2 * hdim])) + 1.0)
        r = rz[:, :hdim]
        z = rz[:, hdim:]
        n = jnp.tanh(gi[:, 2 * hdim:] + r * (gh[:, 2 * hdim:] + bhn_ref[...]))
        h_new = (1.0 - z) * n + z * h
        hs_ref[i] = h_new.astype(hs_ref.dtype)               # pre-reset hidden
        return h_new * mask_ref[i]                           # (TB,1) reset mask

    h_scratch[...] = jax.lax.fori_loop(0, t_blk, step, h_scratch[...],
                                       unroll=True)

    # Fused output head for this time block (hs block is already in VMEM).
    w_out = wout_ref[...]
    b_out = bout_ref[...]
    for t in range(t_blk):
        q_ref[t] = (jnp.dot(hs_ref[t], w_out, preferred_element_type=jnp.float32)
                    + b_out).astype(q_ref.dtype)


# ---------------------------------------------------------------------------
# Tile-size heuristics (generation-aware: vreg pressure, VMEM budget, megacore).
# ---------------------------------------------------------------------------
def _pick_t_blk(ts):
    if ts <= 16:
        return ts
    for cand in range(16, 0, -1):          # largest divisor <= 16 (no tail steps)
        if ts % cand == 0:
            return cand
    return 1


def _pick_tb(B, H, t_blk, out_dim):
    # vreg pressure: ~6-7 live (TB,H) f32 tiles per step -> TB*H <~ 8K elems.
    cap_vreg = max(8, (8192 // max(H, 1)) // 8 * 8)
    # pipeline buffers: 2 bufs x T_BLK x TB x (3H gi + H hs + out_dim q + 1 mask)
    per_row = 2 * t_blk * (4 * H + out_dim + 1) * 4
    cap_vmem = max(8, ((8 * 1024 * 1024) // per_row) // 8 * 8)
    cap = min(cap_vreg, cap_vmem)
    if B >= 16:
        # at least 2 batch tiles so the parallel axis can shard across the two
        # TensorCores on v7x.
        half = ((-(-B // 2)) + 7) // 8 * 8
        cap = min(cap, half)
    return min(B, max(8, cap))             # multiple of 8, or == B when B < 8


# ---------------------------------------------------------------------------
# Wrapper: PyTorch layout glue + hoisted input matmul around the fused kernel.
# ---------------------------------------------------------------------------
def recurrent_head_forward(x, hidden_state, reset, params):
    """x: (bs, ts, na, H); hidden_state: (bs, na, H); reset: (bs, ts).

    Returns (q, hs) matching PyTorch RecurrentHead.forward:
      q: (bs, ts, na, out_dim), hs: (bs, ts, na, H).
    """
    f32 = jnp.float32
    bs, ts, na, H = x.shape
    B = bs * na
    out_dim = params["w_out"].shape[1]

    w_ih = params["w_ih"].astype(f32)      # (H, 3H) = torch weight_ih^T
    w_hh = params["w_hh"].astype(f32)      # (H, 3H) = torch weight_hh^T
    b_ih = params["b_ih"].astype(f32)      # (1, 3H)
    b_hh = params["b_hh"].astype(f32)      # (1, 3H)
    w_out = params["w_out"].astype(f32)    # (H, out_dim)
    b_out = params["b_out"].astype(f32)    # (1, out_dim)

    # Time-major agent-batch rows for the recurrence: (ts*B, H).
    x2d = jnp.transpose(x.astype(f32), (1, 0, 2, 3)).reshape(ts * B, H)

    # ---- (1) Input projection hoisted out of the serial loop: ONE fused
    #          matmul over all timesteps and all three gates (N = 3H).
    #          The r/z recurrent biases are pre-folded; b_hn stays in-kernel
    #          (it is scaled by r).
    b_fused = jnp.concatenate([b_ih[:, :2 * H] + b_hh[:, :2 * H],
                               b_ih[:, 2 * H:]], axis=1)          # (1, 3H)
    gi = _matmul_bias(x2d, w_ih, b_fused).reshape(ts, B, 3 * H)

    # ---- (2) Per-row reset mask: (ts, B, 1) f32 (NOT broadcast to H lanes).
    mask = jnp.repeat((1.0 - reset.astype(f32)).T, na, axis=1)[:, :, None]

    h0 = hidden_state.reshape(B, H).astype(f32)
    b_hh_n = b_hh[:, 2 * H:]                                      # (1, H)

    # ---- (3) Recurrence + fused head kernel.
    T_BLK = _pick_t_blk(ts)
    TB = _pick_tb(B, H, T_BLK, out_dim)
    grid = (pl.cdiv(B, TB), ts // T_BLK)

    hs_tm, q_tm = pl.pallas_call(
        functools.partial(_gru_head_kernel, t_blk=T_BLK, hdim=H),
        out_shape=(jax.ShapeDtypeStruct((ts, B, H), f32),
                   jax.ShapeDtypeStruct((ts, B, out_dim), f32)),
        grid_spec=pltpu.PrefetchScalarGridSpec(
            num_scalar_prefetch=0,
            grid=grid,
            in_specs=[
                pl.BlockSpec((T_BLK, TB, 3 * H), lambda b, t: (t, b, 0)),   # gi
                pl.BlockSpec((T_BLK, TB, 1), lambda b, t: (t, b, 0)),       # mask
                pl.BlockSpec((TB, H), lambda b, t: (b, 0)),                 # h0
                pl.BlockSpec((H, 3 * H), lambda b, t: (0, 0)),              # W_hh
                pl.BlockSpec((1, H), lambda b, t: (0, 0)),                  # b_hh_n
                pl.BlockSpec((H, out_dim), lambda b, t: (0, 0)),            # W_out
                pl.BlockSpec((1, out_dim), lambda b, t: (0, 0)),            # b_out
            ],
            out_specs=[
                pl.BlockSpec((T_BLK, TB, H), lambda b, t: (t, b, 0)),       # hs
                pl.BlockSpec((T_BLK, TB, out_dim), lambda b, t: (t, b, 0)), # q
            ],
            scratch_shapes=[pltpu.VMEM((TB, H), jnp.float32)],              # recurrent h
        ),
        compiler_params=pltpu.CompilerParams(
            # Batch tiles are independent recurrences (shardable across TCs on
            # v7x); time must remain sequential.
            dimension_semantics=("parallel", "arbitrary"),
            vmem_limit_bytes=32 * 1024 * 1024,
        ),
    )(gi, mask, h0, w_hh, b_hh_n, w_out, b_out)

    # Back to PyTorch layout (bs, ts, na, .).
    hs = hs_tm.reshape(ts, bs, na, H).transpose(1, 0, 2, 3)
    q = q_tm.reshape(ts, bs, na, out_dim).transpose(1, 0, 2, 3)
    return q, hs


def _reference_forward(x, hidden_state, reset, params):
    """Pure-JAX re-implementation of the PyTorch module, for verification."""
    bs, ts, na, H = x.shape
    B = bs * na
    h = hidden_state.reshape(B, H)
    wih, whh = params["w_ih"], params["w_hh"]
    bih, bhh = params["b_ih"][0], params["b_hh"][0]
    hs_list = []
    for t in range(ts):
        xt = x[:, t].reshape(B, H)
        gi = xt @ wih + bih
        gh = h @ whh + bhh
        r = jax.nn.sigmoid(gi[:, :H] + gh[:, :H])
        z = jax.nn.sigmoid(gi[:, H:2 * H] + gh[:, H:2 * H])
        n = jnp.tanh(gi[:, 2 * H:] + r * gh[:, 2 * H:])
        h = (1.0 - z) * n + z * h
        hs_list.append(h.reshape(bs, na, H))
        mask_t = jnp.repeat((1.0 - reset[:, t]), na)[:, None]      # repeat_interleave
        h = h * mask_t
    hs = jnp.stack(hs_list, axis=1)                                # (bs, ts, na, H)
    q = hs @ params["w_out"] + params["b_out"][0]
    return q, hs


if __name__ == "__main__":
    # Small, forward-consistent shapes.
    bs, ts, na, H, out_dim = 2, 8, 4, 32, 8

    key = jax.random.PRNGKey(0)
    k = jax.random.split(key, 10)
    scale = 1.0 / np.sqrt(H)

    # Deterministic synthetic parameters (GRUCell + Linear).
    # PyTorch weight_ih is (3H, H); we store its transpose (H, 3H) for x @ W^T.
    params = {
        "w_ih": jax.random.uniform(k[0], (H, 3 * H), jnp.float32, -scale, scale),
        "w_hh": jax.random.uniform(k[1], (H, 3 * H), jnp.float32, -scale, scale),
        "b_ih": jax.random.uniform(k[2], (1, 3 * H), jnp.float32, -scale, scale),
        "b_hh": jax.random.uniform(k[3], (1, 3 * H), jnp.float32, -scale, scale),
        "w_out": jax.random.uniform(k[4], (H, out_dim), jnp.float32, -scale, scale),
        "b_out": jax.random.uniform(k[5], (1, out_dim), jnp.float32, -scale, scale),
    }

    x = jax.random.normal(k[6], (bs, ts, na, H), jnp.float32)
    hidden_state = jax.random.normal(k[7], (bs, na, H), jnp.float32)
    # Binary reset flags per (env, timestep).
    reset = (jax.random.uniform(k[8], (bs, ts)) < 0.3).astype(jnp.float32)

    fwd = jax.jit(recurrent_head_forward)
    q, hs = jax.block_until_ready(fwd(x, hidden_state, reset, params))

    q_ref, hs_ref = _reference_forward(x, hidden_state, reset, params)
    np.testing.assert_allclose(np.asarray(hs), np.asarray(hs_ref), rtol=1e-5, atol=1e-5)
    np.testing.assert_allclose(np.asarray(q), np.asarray(q_ref), rtol=1e-5, atol=1e-5)

    print("KERNEL_OK")
</pallas_src>

<mosaic_0001>
module attributes {stable_mosaic.version = 11 : i64} {
  func.func @_matmul_bias_kernel(%arg0: i32, %arg1: memref<64x32xf32, #tpu.memory_space<vmem>>, %arg2: memref<32x96xf32, #tpu.memory_space<vmem>>, %arg3: memref<1x96xf32, #tpu.memory_space<vmem>>, %arg4: memref<64x96xf32, #tpu.memory_space<vmem>>) attributes {dimension_semantics = [#tpu.dimension_semantics<parallel>], iteration_bounds = array<i64: 1>, scalar_prefetch = 0 : i64, scratch_operands = 0 : i64, tpu.core_type = #tpu.core_type<tc>, window_params = [{transform_indices = @transform_0, window_bounds = array<i64: 64, 32>}, {pipeline_mode = #tpu.pipeline_mode<synchronous>, transform_indices = @transform_1, window_bounds = array<i64: 32, 96>}, {pipeline_mode = #tpu.pipeline_mode<synchronous>, transform_indices = @transform_2, window_bounds = array<i64: 1, 96>}, {transform_indices = @transform_3, window_bounds = array<i64: 64, 96>}]} {
    %c0 = arith.constant 0 : index
    %c0_0 = arith.constant 0 : index
    %0 = vector.load %arg1[%c0, %c0_0] : memref<64x32xf32, #tpu.memory_space<vmem>>, vector<64x32xf32>
    %c0_1 = arith.constant 0 : index
    %c0_2 = arith.constant 0 : index
    %1 = vector.load %arg2[%c0_1, %c0_2] : memref<32x96xf32, #tpu.memory_space<vmem>>, vector<32x96xf32>
    %cst = arith.constant dense<0.000000e+00> : vector<64x96xf32>
    %2 = tpu.matmul %0, %1, %cst {dimension_numbers = #tpu.dot_dimension_numbers<[1], [0], [0], [1], [0, 0, 1, 1], [], []>} : vector<64x32xf32>, vector<32x96xf32>, vector<64x96xf32> -> vector<64x96xf32>
    %c0_3 = arith.constant 0 : index
    %c0_4 = arith.constant 0 : index
    %3 = vector.load %arg3[%c0_3, %c0_4] : memref<1x96xf32, #tpu.memory_space<vmem>>, vector<1x96xf32>
    %4 = vector.broadcast %3 : vector<1x96xf32> to vector<64x96xf32>
    %5 = arith.addf %2, %4 : vector<64x96xf32>
    %c0_5 = arith.constant 0 : index
    %c0_6 = arith.constant 0 : index
    %6 = vector.load %arg4[%c0_5, %c0_6] : memref<64x96xf32, #tpu.memory_space<vmem>>, vector<64x96xf32>
    tpu.vector_store %arg4[%c0_5, %c0_6], %5 {strides = array<i32>} : memref<64x96xf32, #tpu.memory_space<vmem>>, vector<64x96xf32>,
    return
  }
  func.func @transform_0(%arg0: i32) -> (i32, i32) {
    %c0_i32 = arith.constant 0 : i32
    %c0_i32_0 = arith.constant 0 : i32
    return %arg0, %c0_i32 : i32, i32
  }
  func.func @transform_1(%arg0: i32) -> (i32, i32) {
    %c0_i32 = arith.constant 0 : i32
    %c0_i32_0 = arith.constant 0 : i32
    %c0_i32_1 = arith.constant 0 : i32
    return %c0_i32, %c0_i32_0 : i32, i32
  }
  func.func @transform_2(%arg0: i32) -> (i32, i32) {
    %c0_i32 = arith.constant 0 : i32
    %c0_i32_0 = arith.constant 0 : i32
    %c0_i32_1 = arith.constant 0 : i32
    return %c0_i32, %c0_i32_0 : i32, i32
  }
  func.func @transform_3(%arg0: i32) -> (i32, i32) {
    %c0_i32 = arith.constant 0 : i32
    %c0_i32_0 = arith.constant 0 : i32
    return %arg0, %c0_i32 : i32, i32
  }
}

module attributes {stable_mosaic.version = 11 : i64} {
  func.func @_gru_head_kernel(%arg0: i32, %arg1: i32, %arg2: memref<8x8x96xf32, #tpu.memory_space<vmem>>, %arg3: memref<8x8x1xf32, #tpu.memory_space<vmem>>, %arg4: memref<8x32xf32, #tpu.memory_space<vmem>>, %arg5: memref<32x96xf32, #tpu.memory_space<vmem>>, %arg6: memref<1x32xf32, #tpu.memory_space<vmem>>, %arg7: memref<32x8xf32, #tpu.memory_space<vmem>>, %arg8: memref<1x8xf32, #tpu.memory_space<vmem>>, %arg9: memref<8x8x32xf32, #tpu.memory_space<vmem>>, %arg10: memref<8x8x8xf32, #tpu.memory_space<vmem>>, %arg11: memref<8x32xf32, #tpu.memory_space<vmem>>) attributes {dimension_semantics = [#tpu.dimension_semantics<parallel>, #tpu.dimension_semantics<arbitrary>], iteration_bounds = array<i64: 1, 1>, scalar_prefetch = 0 : i64, scratch_operands = 1 : i64, tpu.core_type = #tpu.core_type<tc>, window_params = [{transform_indices = @transform_0, window_bounds = array<i64: 8, 8, 96>}, {transform_indices = @transform_1, window_bounds = array<i64: 8, 8, 1>}, {transform_indices = @transform_2, window_bounds = array<i64: 8, 32>}, {pipeline_mode = #tpu.pipeline_mode<synchronous>, transform_indices = @transform_3, window_bounds = array<i64: 32, 96>}, {pipeline_mode = #tpu.pipeline_mode<synchronous>, transform_indices = @transform_4, window_bounds = array<i64: 1, 32>}, {pipeline_mode = #tpu.pipeline_mode<synchronous>, transform_indices = @transform_5, window_bounds = array<i64: 32, 8>}, {pipeline_mode = #tpu.pipeline_mode<synchronous>, transform_indices = @transform_6, window_bounds = array<i64: 1, 8>}, {transform_indices = @transform_7, window_bounds = array<i64: 8, 8, 32>}, {transform_indices = @transform_8, window_bounds = array<i64: 8, 8, 8>}]} {
    %c0_i32 = arith.constant 0 : i32
    %0 = arith.cmpi eq, %arg1, %c0_i32 : i32
    %1 = arith.extui %0 : i1 to i32
    %c0_i32_0 = arith.constant 0 : i32
    %2 = arith.cmpi ne, %1, %c0_i32_0 : i32
    scf.if %2 {
      %c0_177 = arith.constant 0 : index
      %c0_178 = arith.constant 0 : index
      %383 = vector.load %arg4[%c0_177, %c0_178] : memref<8x32xf32, #tpu.memory_space<vmem>>, vector<8x32xf32>
      %c0_179 = arith.constant 0 : index
      %c0_180 = arith.constant 0 : index
      %384 = vector.load %arg11[%c0_179, %c0_180] : memref<8x32xf32, #tpu.memory_space<vmem>>, vector<8x32xf32>
      tpu.vector_store %arg11[%c0_179, %c0_180], %383 {strides = array<i32>} : memref<8x32xf32, #tpu.memory_space<vmem>>, vector<8x32xf32>,
    } else {
    }
    %c0 = arith.constant 0 : index
    %c0_1 = arith.constant 0 : index
    %3 = vector.load %arg11[%c0, %c0_1] : memref<8x32xf32, #tpu.memory_space<vmem>>, vector<8x32xf32>
    %c0_i32_2 = arith.constant 0 : i32
    %c0_3 = arith.constant 0 : index
    %c0_4 = arith.constant 0 : index
    %4 = vector.load %arg5[%c0_3, %c0_4] : memref<32x96xf32, #tpu.memory_space<vmem>>, vector<32x96xf32>
    %cst = arith.constant dense<0.000000e+00> : vector<8x96xf32>
    %5 = tpu.matmul %3, %4, %cst {dimension_numbers = #tpu.dot_dimension_numbers<[1], [0], [0], [1], [0, 0, 1, 1], [], []>} : vector<8x32xf32>, vector<32x96xf32>, vector<8x96xf32> -> vector<8x96xf32>
    %6 = arith.index_cast %c0_i32_2 : i32 to index
    %c0_5 = arith.constant 0 : index
    %c0_6 = arith.constant 0 : index
    %7 = vector.load %arg2[%6, %c0_5, %c0_6] : memref<8x8x96xf32, #tpu.memory_space<vmem>>, vector<1x8x96xf32>
    %8 = vector.shape_cast %7 : vector<1x8x96xf32> to vector<8x96xf32>
    %9 = vector.extract_strided_slice %8 {offsets = [0, 0], sizes = [8, 64], strides = [1, 1]} : vector<8x96xf32> to vector<8x64xf32>
    %10 = vector.extract_strided_slice %5 {offsets = [0, 0], sizes = [8, 64], strides = [1, 1]} : vector<8x96xf32> to vector<8x64xf32>
    %11 = arith.addf %9, %10 : vector<8x64xf32>
    %cst_7 = arith.constant 5.000000e-01 : f32
    %12 = vector.broadcast %cst_7 : f32 to vector<8x64xf32>
    %13 = arith.mulf %12, %11 : vector<8x64xf32>
    %14 = math.tanh %13 : vector<8x64xf32>
    %cst_8 = arith.constant 1.000000e+00 : f32
    %15 = vector.broadcast %cst_8 : f32 to vector<8x64xf32>
    %16 = arith.addf %14, %15 : vector<8x64xf32>
    %cst_9 = arith.constant 5.000000e-01 : f32
    %17 = vector.broadcast %cst_9 : f32 to vector<8x64xf32>
    %18 = arith.mulf %17, %16 : vector<8x64xf32>
    %19 = vector.extract_strided_slice %18 {offsets = [0, 0], sizes = [8, 32], strides = [1, 1]} : vector<8x64xf32> to vector<8x32xf32>
    %20 = vector.extract_strided_slice %18 {offsets = [0, 32], sizes = [8, 32], strides = [1, 1]} : vector<8x64xf32> to vector<8x32xf32>
    %21 = vector.extract_strided_slice %8 {offsets = [0, 64], sizes = [8, 32], strides = [1, 1]} : vector<8x96xf32> to vector<8x32xf32>
    %22 = vector.extract_strided_slice %5 {offsets = [0, 64], sizes = [8, 32], strides = [1, 1]} : vector<8x96xf32> to vector<8x32xf32>
    %c0_10 = arith.constant 0 : index
    %c0_11 = arith.constant 0 : index
    %23 = vector.load %arg6[%c0_10, %c0_11] : memref<1x32xf32, #tpu.memory_space<vmem>>, vector<1x32xf32>
    %24 = vector.broadcast %23 : vector<1x32xf32> to vector<8x32xf32>
    %25 = arith.addf %22, %24 : vector<8x32xf32>
    %26 = arith.mulf %19, %25 : vector<8x32xf32>
    %27 = arith.addf %21, %26 : vector<8x32xf32>
    %28 = math.tanh %27 : vector<8x32xf32>
    %cst_12 = arith.constant 1.000000e+00 : f32
    %29 = vector.broadcast %cst_12 : f32 to vector<8x32xf32>
    %30 = arith.subf %29, %20 : vector<8x32xf32>
    %31 = arith.mulf %30, %28 : vector<8x32xf32>
    %32 = arith.mulf %20, %3 : vector<8x32xf32>
    %33 = arith.addf %31, %32 : vector<8x32xf32>
    %34 = arith.index_cast %c0_i32_2 : i32 to index
    %c0_13 = arith.constant 0 : index
    %c0_14 = arith.constant 0 : index
    %35 = vector.load %arg9[%34, %c0_13, %c0_14] : memref<8x8x32xf32, #tpu.memory_space<vmem>>, vector<1x8x32xf32>
    %36 = vector.shape_cast %35 : vector<1x8x32xf32> to vector<8x32xf32>
    %37 = vector.shape_cast %33 : vector<8x32xf32> to vector<1x8x32xf32>
    tpu.vector_store %arg9[%34, %c0_13, %c0_14], %37 {strides = array<i32>} : memref<8x8x32xf32, #tpu.memory_space<vmem>>, vector<1x8x32xf32>,
    %38 = arith.index_cast %c0_i32_2 : i32 to index
    %c0_15 = arith.constant 0 : index
    %c0_16 = arith.constant 0 : index
    %39 = vector.load %arg3[%38, %c0_15, %c0_16] : memref<8x8x1xf32, #tpu.memory_space<vmem>>, vector<1x8x1xf32>
    %40 = vector.shape_cast %39 : vector<1x8x1xf32> to vector<8x1xf32>
    %41 = vector.broadcast %40 : vector<8x1xf32> to vector<8x32xf32>
    %42 = arith.mulf %33, %41 : vector<8x32xf32>
    %c1_i32 = arith.constant 1 : i32
    %c0_17 = arith.constant 0 : index
    %c0_18 = arith.constant 0 : index
    %43 = vector.load %arg5[%c0_17, %c0_18] : memref<32x96xf32, #tpu.memory_space<vmem>>, vector<32x96xf32>
    %cst_19 = arith.constant dense<0.000000e+00> : vector<8x96xf32>
    %44 = tpu.matmul %42, %43, %cst_19 {dimension_numbers = #tpu.dot_dimension_numbers<[1], [0], [0], [1], [0, 0, 1, 1], [], []>} : vector<8x32xf32>, vector<32x96xf32>, vector<8x96xf32> -> vector<8x96xf32>
    %45 = arith.index_cast %c1_i32 : i32 to index
    %c0_20 = arith.constant 0 : index
    %c0_21 = arith.constant 0 : index
    %46 = vector.load %arg2[%45, %c0_20, %c0_21] : memref<8x8x96xf32, #tpu.memory_space<vmem>>, vector<1x8x96xf32>
    %47 = vector.shape_cast %46 : vector<1x8x96xf32> to vector<8x96xf32>
    %48 = vector.extract_strided_slice %47 {offsets = [0, 0], sizes = [8, 64], strides = [1, 1]} : vector<8x96xf32> to vector<8x64xf32>
    %49 = vector.extract_strided_slice %44 {offsets = [0, 0], sizes = [8, 64], strides = [1, 1]} : vector<8x96xf32> to vector<8x64xf32>
    %50 = arith.addf %48, %49 : vector<8x64xf32>
    %cst_22 = arith.constant 5.000000e-01 : f32
    %51 = vector.broadcast %cst_22 : f32 to vector<8x64xf32>
    %52 = arith.mulf %51, %50 : vector<8x64xf32>
    %53 = math.tanh %52 : vector<8x64xf32>
    %cst_23 = arith.constant 1.000000e+00 : f32
    %54 = vector.broadcast %cst_23 : f32 to vector<8x64xf32>
    %55 = arith.addf %53, %54 : vector<8x64xf32>
    %cst_24 = arith.constant 5.000000e-01 : f32
    %56 = vector.broadcast %cst_24 : f32 to vector<8x64xf32>
    %57 = arith.mulf %56, %55 : vector<8x64xf32>
    %58 = vector.extract_strided_slice %57 {offsets = [0, 0], sizes = [8, 32], strides = [1, 1]} : vector<8x64xf32> to vector<8x32xf32>
    %59 = vector.extract_strided_slice %57 {offsets = [0, 32], sizes = [8, 32], strides = [1, 1]} : vector<8x64xf32> to vector<8x32xf32>
    %60 = vector.extract_strided_slice %47 {offsets = [0, 64], sizes = [8, 32], strides = [1, 1]} : vector<8x96xf32> to vector<8x32xf32>
    %61 = vector.extract_strided_slice %44 {offsets = [0, 64], sizes = [8, 32], strides = [1, 1]} : vector<8x96xf32> to vector<8x32xf32>
    %c0_25 = arith.constant 0 : index
    %c0_26 = arith.constant 0 : index
    %62 = vector.load %arg6[%c0_25, %c0_26] : memref<1x32xf32, #tpu.memory_space<vmem>>, vector<1x32xf32>
    %63 = vector.broadcast %62 : vector<1x32xf32> to vector<8x32xf32>
    %64 = arith.addf %61, %63 : vector<8x32xf32>
    %65 = arith.mulf %58, %64 : vector<8x32xf32>
    %66 = arith.addf %60, %65 : vector<8x32xf32>
    %67 = math.tanh %66 : vector<8x32xf32>
    %cst_27 = arith.constant 1.000000e+00 : f32
    %68 = vector.broadcast %cst_27 : f32 to vector<8x32xf32>
    %69 = arith.subf %68, %59 : vector<8x32xf32>
    %70 = arith.mulf %69, %67 : vector<8x32xf32>
    %71 = arith.mulf %59, %42 : vector<8x32xf32>
    %72 = arith.addf %70, %71 : vector<8x32xf32>
    %73 = arith.index_cast %c1_i32 : i32 to index
    %c0_28 = arith.constant 0 : index
    %c0_29 = arith.constant 0 : index
    %74 = vector.load %arg9[%73, %c0_28, %c0_29] : memref<8x8x32xf32, #tpu.memory_space<vmem>>, vector<1x8x32xf32>
    %75 = vector.shape_cast %74 : vector<1x8x32xf32> to vector<8x32xf32>
    %76 = vector.shape_cast %72 : vector<8x32xf32> to vector<1x8x32xf32>
    tpu.vector_store %arg9[%73, %c0_28, %c0_29], %76 {strides = array<i32>} : memref<8x8x32xf32, #tpu.memory_space<vmem>>, vector<1x8x32xf32>,
    %77 = arith.index_cast %c1_i32 : i32 to index
    %c0_30 = arith.constant 0 : index
    %c0_31 = arith.constant 0 : index
    %78 = vector.load %arg3[%77, %c0_30, %c0_31] : memref<8x8x1xf32, #tpu.memory_space<vmem>>, vector<1x8x1xf32>
    %79 = vector.shape_cast %78 : vector<1x8x1xf32> to vector<8x1xf32>
    %80 = vector.broadcast %79 : vector<8x1xf32> to vector<8x32xf32>
    %81 = arith.mulf %72, %80 : vector<8x32xf32>
    %c2_i32 = arith.constant 2 : i32
    %c0_32 = arith.constant 0 : index
    %c0_33 = arith.constant 0 : index
    %82 = vector.load %arg5[%c0_32, %c0_33] : memref<32x96xf32, #tpu.memory_space<vmem>>, vector<32x96xf32>
    %cst_34 = arith.constant dense<0.000000e+00> : vector<8x96xf32>
    %83 = tpu.matmul %81, %82, %cst_34 {dimension_numbers = #tpu.dot_dimension_numbers<[1], [0], [0], [1], [0, 0, 1, 1], [], []>} : vector<8x32xf32>, vector<32x96xf32>, vector<8x96xf32> -> vector<8x96xf32>
    %84 = arith.index_cast %c2_i32 : i32 to index
    %c0_35 = arith.constant 0 : index
    %c0_36 = arith.constant 0 : index
    %85 = vector.load %arg2[%84, %c0_35, %c0_36] : memref<8x8x96xf32, #tpu.memory_space<vmem>>, vector<1x8x96xf32>
    %86 = vector.shape_cast %85 : vector<1x8x96xf32> to vector<8x96xf32>
    %87 = vector.extract_strided_slice %86 {offsets = [0, 0], sizes = [8, 64], strides = [1, 1]} : vector<8x96xf32> to vector<8x64xf32>
    %88 = vector.extract_strided_slice %83 {offsets = [0, 0], sizes = [8, 64], strides = [1, 1]} : vector<8x96xf32> to vector<8x64xf32>
    %89 = arith.addf %87, %88 : vector<8x64xf32>
    %cst_37 = arith.constant 5.000000e-01 : f32
    %90 = vector.broadcast %cst_37 : f32 to vector<8x64xf32>
    %91 = arith.mulf %90, %89 : vector<8x64xf32>
    %92 = math.tanh %91 : vector<8x64xf32>
    %cst_38 = arith.constant 1.000000e+00 : f32
    %93 = vector.broadcast %cst_38 : f32 to vector<8x64xf32>
    %94 = arith.addf %92, %93 : vector<8x64xf32>
    %cst_39 = arith.constant 5.000000e-01 : f32
    %95 = vector.broadcast %cst_39 : f32 to vector<8x64xf32>
    %96 = arith.mulf %95, %94 : vector<8x64xf32>
    %97 = vector.extract_strided_slice %96 {offsets = [0, 0], sizes = [8, 32], strides = [1, 1]} : vector<8x64xf32> to vector<8x32xf32>
    %98 = vector.extract_strided_slice %96 {offsets = [0, 32], sizes = [8, 32], strides = [1, 1]} : vector<8x64xf32> to vector<8x32xf32>
    %99 = vector.extract_strided_slice %86 {offsets = [0, 64], sizes = [8, 32], strides = [1, 1]} : vector<8x96xf32> to vector<8x32xf32>
    %100 = vector.extract_strided_slice %83 {offsets = [0, 64], sizes = [8, 32], strides = [1, 1]} : vector<8x96xf32> to vector<8x32xf32>
    %c0_40 = arith.constant 0 : index
    %c0_41 = arith.constant 0 : index
    %101 = vector.load %arg6[%c0_40, %c0_41] : memref<1x32xf32, #tpu.memory_space<vmem>>, vector<1x32xf32>
    %102 = vector.broadcast %101 : vector<1x32xf32> to vector<8x32xf32>
    %103 = arith.addf %100, %102 : vector<8x32xf32>
    %104 = arith.mulf %97, %103 : vector<8x32xf32>
    %105 = arith.addf %99, %104 : vector<8x32xf32>
    %106 = math.tanh %105 : vector<8x32xf32>
    %cst_42 = arith.constant 1.000000e+00 : f32
    %107 = vector.broadcast %cst_42 : f32 to vector<8x32xf32>
    %108 = arith.subf %107, %98 : vector<8x32xf32>
    %109 = arith.mulf %108, %106 : vector<8x32xf32>
    %110 = arith.mulf %98, %81 : vector<8x32xf32>
    %111 = arith.addf %109, %110 : vector<8x32xf32>
    %112 = arith.index_cast %c2_i32 : i32 to index
    %c0_43 = arith.constant 0 : index
    %c0_44 = arith.constant 0 : index
    %113 = vector.load %arg9[%112, %c0_43, %c0_44] : memref<8x8x32xf32, #tpu.memory_space<vmem>>, vector<1x8x32xf32>
    %114 = vector.shape_cast %113 : vector<1x8x32xf32> to vector<8x32xf32>
    %115 = vector.shape_cast %111 : vector<8x32xf32> to vector<1x8x32xf32>
    tpu.vector_store %arg9[%112, %c0_43, %c0_44], %115 {strides = array<i32>} : memref<8x8x32xf32, #tpu.memory_space<vmem>>, vector<1x8x32xf32>,
    %116 = arith.index_cast %c2_i32 : i32 to index
    %c0_45 = arith.constant 0 : index
    %c0_46 = arith.constant 0 : index
    %117 = vector.load %arg3[%116, %c0_45, %c0_46] : memref<8x8x1xf32, #tpu.memory_space<vmem>>, vector<1x8x1xf32>
    %118 = vector.shape_cast %117 : vector<1x8x1xf32> to vector<8x1xf32>
    %119 = vector.broadcast %118 : vector<8x1xf32> to vector<8x32xf32>
    %120 = arith.mulf %111, %119 : vector<8x32xf32>
    %c3_i32 = arith.constant 3 : i32
    %c0_47 = arith.constant 0 : index
    %c0_48 = arith.constant 0 : index
    %121 = vector.load %arg5[%c0_47, %c0_48] : memref<32x96xf32, #tpu.memory_space<vmem>>, vector<32x96xf32>
    %cst_49 = arith.constant dense<0.000000e+00> : vector<8x96xf32>
    %122 = tpu.matmul %120, %121, %cst_49 {dimension_numbers = #tpu.dot_dimension_numbers<[1], [0], [0], [1], [0, 0, 1, 1], [], []>} : vector<8x32xf32>, vector<32x96xf32>, vector<8x96xf32> -> vector<8x96xf32>
    %123 = arith.index_cast %c3_i32 : i32 to index
    %c0_50 = arith.constant 0 : index
    %c0_51 = arith.constant 0 : index
    %124 = vector.load %arg2[%123, %c0_50, %c0_51] : memref<8x8x96xf32, #tpu.memory_space<vmem>>, vector<1x8x96xf32>
    %125 = vector.shape_cast %124 : vector<1x8x96xf32> to vector<8x96xf32>
    %126 = vector.extract_strided_slice %125 {offsets = [0, 0], sizes = [8, 64], strides = [1, 1]} : vector<8x96xf32> to vector<8x64xf32>
    %127 = vector.extract_strided_slice %122 {offsets = [0, 0], sizes = [8, 64], strides = [1, 1]} : vector<8x96xf32> to vector<8x64xf32>
    %128 = arith.addf %126, %127 : vector<8x64xf32>
    %cst_52 = arith.constant 5.000000e-01 : f32
    %129 = vector.broadcast %cst_52 : f32 to vector<8x64xf32>
    %130 = arith.mulf %129, %128 : vector<8x64xf32>
    %131 = math.tanh %130 : vector<8x64xf32>
    %cst_53 = arith.constant 1.000000e+00 : f32
    %132 = vector.broadcast %cst_53 : f32 to vector<8x64xf32>
    %133 = arith.addf %131, %132 : vector<8x64xf32>
    %cst_54 = arith.constant 5.000000e-01 : f32
    %134 = vector.broadcast %cst_54 : f32 to vector<8x64xf32>
    %135 = arith.mulf %134, %133 : vector<8x64xf32>
    %136 = vector.extract_strided_slice %135 {offsets = [0, 0], sizes = [8, 32], strides = [1, 1]} : vector<8x64xf32> to vector<8x32xf32>
    %137 = vector.extract_strided_slice %135 {offsets = [0, 32], sizes = [8, 32], strides = [1, 1]} : vector<8x64xf32> to vector<8x32xf32>
    %138 = vector.extract_strided_slice %125 {offsets = [0, 64], sizes = [8, 32], strides = [1, 1]} : vector<8x96xf32> to vector<8x32xf32>
    %139 = vector.extract_strided_slice %122 {offsets = [0, 64], sizes = [8, 32], strides = [1, 1]} : vector<8x96xf32> to vector<8x32xf32>
    %c0_55 = arith.constant 0 : index
    %c0_56 = arith.constant 0 : index
    %140 = vector.load %arg6[%c0_55, %c0_56] : memref<1x32xf32, #tpu.memory_space<vmem>>, vector<1x32xf32>
    %141 = vector.broadcast %140 : vector<1x32xf32> to vector<8x32xf32>
    %142 = arith.addf %139, %141 : vector<8x32xf32>
    %143 = arith.mulf %136, %142 : vector<8x32xf32>
    %144 = arith.addf %138, %143 : vector<8x32xf32>
    %145 = math.tanh %144 : vector<8x32xf32>
    %cst_57 = arith.constant 1.000000e+00 : f32
    %146 = vector.broadcast %cst_57 : f32 to vector<8x32xf32>
    %147 = arith.subf %146, %137 : vector<8x32xf32>
    %148 = arith.mulf %147, %145 : vector<8x32xf32>
    %149 = arith.mulf %137, %120 : vector<8x32xf32>
    %150 = arith.addf %148, %149 : vector<8x32xf32>
    %151 = arith.index_cast %c3_i32 : i32 to index
    %c0_58 = arith.constant 0 : index
    %c0_59 = arith.constant 0 : index
    %152 = vector.load %arg9[%151, %c0_58, %c0_59] : memref<8x8x32xf32, #tpu.memory_space<vmem>>, vector<1x8x32xf32>
    %153 = vector.shape_cast %152 : vector<1x8x32xf32> to vector<8x32xf32>
    %154 = vector.shape_cast %150 : vector<8x32xf32> to vector<1x8x32xf32>
    tpu.vector_store %arg9[%151, %c0_58, %c0_59], %154 {strides = array<i32>} : memref<8x8x32xf32, #tpu.memory_space<vmem>>, vector<1x8x32xf32>,
    %155 = arith.index_cast %c3_i32 : i32 to index
    %c0_60 = arith.constant 0 : index
    %c0_61 = arith.constant 0 : index
    %156 = vector.load %arg3[%155, %c0_60, %c0_61] : memref<8x8x1xf32, #tpu.memory_space<vmem>>, vector<1x8x1xf32>
    %157 = vector.shape_cast %156 : vector<1x8x1xf32> to vector<8x1xf32>
    %158 = vector.broadcast %157 : vector<8x1xf32> to vector<8x32xf32>
    %159 = arith.mulf %150, %158 : vector<8x32xf32>
    %c4_i32 = arith.constant 4 : i32
    %c0_62 = arith.constant 0 : index
    %c0_63 = arith.constant 0 : index
    %160 = vector.load %arg5[%c0_62, %c0_63] : memref<32x96xf32, #tpu.memory_space<vmem>>, vector<32x96xf32>
    %cst_64 = arith.constant dense<0.000000e+00> : vector<8x96xf32>
    %161 = tpu.matmul %159, %160, %cst_64 {dimension_numbers = #tpu.dot_dimension_numbers<[1], [0], [0], [1], [0, 0, 1, 1], [], []>} : vector<8x32xf32>, vector<32x96xf32>, vector<8x96xf32> -> vector<8x96xf32>
    %162 = arith.index_cast %c4_i32 : i32 to index
    %c0_65 = arith.constant 0 : index
    %c0_66 = arith.constant 0 : index
    %163 = vector.load %arg2[%162, %c0_65, %c0_66] : memref<8x8x96xf32, #tpu.memory_space<vmem>>, vector<1x8x96xf32>
    %164 = vector.shape_cast %163 : vector<1x8x96xf32> to vector<8x96xf32>
    %165 = vector.extract_strided_slice %164 {offsets = [0, 0], sizes = [8, 64], strides = [1, 1]} : vector<8x96xf32> to vector<8x64xf32>
    %166 = vector.extract_strided_slice %161 {offsets = [0, 0], sizes = [8, 64], strides = [1, 1]} : vector<8x96xf32> to vector<8x64xf32>
    %167 = arith.addf %165, %166 : vector<8x64xf32>
    %cst_67 = arith.constant 5.000000e-01 : f32
    %168 = vector.broadcast %cst_67 : f32 to vector<8x64xf32>
    %169 = arith.mulf %168, %167 : vector<8x64xf32>
    %170 = math.tanh %169 : vector<8x64xf32>
    %cst_68 = arith.constant 1.000000e+00 : f32
    %171 = vector.broadcast %cst_68 : f32 to vector<8x64xf32>
    %172 = arith.addf %170, %171 : vector<8x64xf32>
    %cst_69 = arith.constant 5.000000e-01 : f32
    %173 = vector.broadcast %cst_69 : f32 to vector<8x64xf32>
    %174 = arith.mulf %173, %172 : vector<8x64xf32>
    %175 = vector.extract_strided_slice %174 {offsets = [0, 0], sizes = [8, 32], strides = [1, 1]} : vector<8x64xf32> to vector<8x32xf32>
    %176 = vector.extract_strided_slice %174 {offsets = [0, 32], sizes = [8, 32], strides = [1, 1]} : vector<8x64xf32> to vector<8x32xf32>
    %177 = vector.extract_strided_slice %164 {offsets = [0, 64], sizes = [8, 32], strides = [1, 1]} : vector<8x96xf32> to vector<8x32xf32>
    %178 = vector.extract_strided_slice %161 {offsets = [0, 64], sizes = [8, 32], strides = [1, 1]} : vector<8x96xf32> to vector<8x32xf32>
    %c0_70 = arith.constant 0 : index
    %c0_71 = arith.constant 0 : index
    %179 = vector.load %arg6[%c0_70, %c0_71] : memref<1x32xf32, #tpu.memory_space<vmem>>, vector<1x32xf32>
    %180 = vector.broadcast %179 : vector<1x32xf32> to vector<8x32xf32>
    %181 = arith.addf %178, %180 : vector<8x32xf32>
    %182 = arith.mulf %175, %181 : vector<8x32xf32>
    %183 = arith.addf %177, %182 : vector<8x32xf32>
    %184 = math.tanh %183 : vector<8x32xf32>
    %cst_72 = arith.constant 1.000000e+00 : f32
    %185 = vector.broadcast %cst_72 : f32 to vector<8x32xf32>
    %186 = arith.subf %185, %176 : vector<8x32xf32>
    %187 = arith.mulf %186, %184 : vector<8x32xf32>
    %188 = arith.mulf %176, %159 : vector<8x32xf32>
    %189 = arith.addf %187, %188 : vector<8x32xf32>
    %190 = arith.index_cast %c4_i32 : i32 to index
    %c0_73 = arith.constant 0 : index
    %c0_74 = arith.constant 0 : index
    %191 = vector.load %arg9[%190, %c0_73, %c0_74] : memref<8x8x32xf32, #tpu.memory_space<vmem>>, vector<1x8x32xf32>
    %192 = vector.shape_cast %191 : vector<1x8x32xf32> to vector<8x32xf32>
    %193 = vector.shape_cast %189 : vector<8x32xf32> to vector<1x8x32xf32>
    tpu.vector_store %arg9[%190, %c0_73, %c0_74], %193 {strides = array<i32>} : memref<8x8x32xf32, #tpu.memory_space<vmem>>, vector<1x8x32xf32>,
    %194 = arith.index_cast %c4_i32 : i32 to index
    %c0_75 = arith.constant 0 : index
    %c0_76 = arith.constant 0 : index
    %195 = vector.load %arg3[%194, %c0_75, %c0_76] : memref<8x8x1xf32, #tpu.memory_space<vmem>>, vector<1x8x1xf32>
    %196 = vector.shape_cast %195 : vector<1x8x1xf32> to vector<8x1xf32>
    %197 = vector.broadcast %196 : vector<8x1xf32> to vector<8x32xf32>
    %198 = arith.mulf %189, %197 : vector<8x32xf32>
    %c5_i32 = arith.constant 5 : i32
    %c0_77 = arith.constant 0 : index
    %c0_78 = arith.constant 0 : index
    %199 = vector.load %arg5[%c0_77, %c0_78] : memref<32x96xf32, #tpu.memory_space<vmem>>, vector<32x96xf32>
    %cst_79 = arith.constant dense<0.000000e+00> : vector<8x96xf32>
    %200 = tpu.matmul %198, %199, %cst_79 {dimension_numbers = #tpu.dot_dimension_numbers<[1], [0], [0], [1], [0, 0, 1, 1], [], []>} : vector<8x32xf32>, vector<32x96xf32>, vector<8x96xf32> -> vector<8x96xf32>
    %201 = arith.index_cast %c5_i32 : i32 to index
    %c0_80 = arith.constant 0 : index
    %c0_81 = arith.constant 0 : index
    %202 = vector.load %arg2[%201, %c0_80, %c0_81] : memref<8x8x96xf32, #tpu.memory_space<vmem>>, vector<1x8x96xf32>
    %203 = vector.shape_cast %202 : vector<1x8x96xf32> to vector<8x96xf32>
    %204 = vector.extract_strided_slice %203 {offsets = [0, 0], sizes = [8, 64], strides = [1, 1]} : vector<8x96xf32> to vector<8x64xf32>
    %205 = vector.extract_strided_slice %200 {offsets = [0, 0], sizes = [8, 64], strides = [1, 1]} : vector<8x96xf32> to vector<8x64xf32>
    %206 = arith.addf %204, %205 : vector<8x64xf32>
    %cst_82 = arith.constant 5.000000e-01 : f32
    %207 = vector.broadcast %cst_82 : f32 to vector<8x64xf32>
    %208 = arith.mulf %207, %206 : vector<8x64xf32>
    %209 = math.tanh %208 : vector<8x64xf32>
    %cst_83 = arith.constant 1.000000e+00 : f32
    %210 = vector.broadcast %cst_83 : f32 to vector<8x64xf32>
    %211 = arith.addf %209, %210 : vector<8x64xf32>
    %cst_84 = arith.constant 5.000000e-01 : f32
    %212 = vector.broadcast %cst_84 : f32 to vector<8x64xf32>
    %213 = arith.mulf %212, %211 : vector<8x64xf32>
    %214 = vector.extract_strided_slice %213 {offsets = [0, 0], sizes = [8, 32], strides = [1, 1]} : vector<8x64xf32> to vector<8x32xf32>
    %215 = vector.extract_strided_slice %213 {offsets = [0, 32], sizes = [8, 32], strides = [1, 1]} : vector<8x64xf32> to vector<8x32xf32>
    %216 = vector.extract_strided_slice %203 {offsets = [0, 64], sizes = [8, 32], strides = [1, 1]} : vector<8x96xf32> to vector<8x32xf32>
    %217 = vector.extract_strided_slice %200 {offsets = [0, 64], sizes = [8, 32], strides = [1, 1]} : vector<8x96xf32> to vector<8x32xf32>
    %c0_85 = arith.constant 0 : index
    %c0_86 = arith.constant 0 : index
    %218 = vector.load %arg6[%c0_85, %c0_86] : memref<1x32xf32, #tpu.memory_space<vmem>>, vector<1x32xf32>
    %219 = vector.broadcast %218 : vector<1x32xf32> to vector<8x32xf32>
    %220 = arith.addf %217, %219 : vector<8x32xf32>
    %221 = arith.mulf %214, %220 : vector<8x32xf32>
    %222 = arith.addf %216, %221 : vector<8x32xf32>
    %223 = math.tanh %222 : vector<8x32xf32>
    %cst_87 = arith.constant 1.000000e+00 : f32
    %224 = vector.broadcast %cst_87 : f32 to vector<8x32xf32>
    %225 = arith.subf %224, %215 : vector<8x32xf32>
    %226 = arith.mulf %225, %223 : vector<8x32xf32>
    %227 = arith.mulf %215, %198 : vector<8x32xf32>
    %228 = arith.addf %226, %227 : vector<8x32xf32>
    %229 = arith.index_cast %c5_i32 : i32 to index
    %c0_88 = arith.constant 0 : index
    %c0_89 = arith.constant 0 : index
    %230 = vector.load %arg9[%229, %c0_88, %c0_89] : memref<8x8x32xf32, #tpu.memory_space<vmem>>, vector<1x8x32xf32>
    %231 = vector.shape_cast %230 : vector<1x8x32xf32> to vector<8x32xf32>
    %232 = vector.shape_cast %228 : vector<8x32xf32> to vector<1x8x32xf32>
    tpu.vector_store %arg9[%229, %c0_88, %c0_89], %232 {strides = array<i32>} : memref<8x8x32xf32, #tpu.memory_space<vmem>>, vector<1x8x32xf32>,
    %233 = arith.index_cast %c5_i32 : i32 to index
    %c0_90 = arith.constant 0 : index
    %c0_91 = arith.constant 0 : index
    %234 = vector.load %arg3[%233, %c0_90, %c0_91] : memref<8x8x1xf32, #tpu.memory_space<vmem>>, vector<1x8x1xf32>
    %235 = vector.shape_cast %234 : vector<1x8x1xf32> to vector<8x1xf32>
    %236 = vector.broadcast %235 : vector<8x1xf32> to vector<8x32xf32>
    %237 = arith.mulf %228, %236 : vector<8x32xf32>
    %c6_i32 = arith.constant 6 : i32
    %c0_92 = arith.constant 0 : index
    %c0_93 = arith.constant 0 : index
    %238 = vector.load %arg5[%c0_92, %c0_93] : memref<32x96xf32, #tpu.memory_space<vmem>>, vector<32x96xf32>
    %cst_94 = arith.constant dense<0.000000e+00> : vector<8x96xf32>
    %239 = tpu.matmul %237, %238, %cst_94 {dimension_numbers = #tpu.dot_dimension_numbers<[1], [0], [0], [1], [0, 0, 1, 1], [], []>} : vector<8x32xf32>, vector<32x96xf32>, vector<8x96xf32> -> vector<8x96xf32>
    %240 = arith.index_cast %c6_i32 : i32 to index
    %c0_95 = arith.constant 0 : index
    %c0_96 = arith.constant 0 : index
    %241 = vector.load %arg2[%240, %c0_95, %c0_96] : memref<8x8x96xf32, #tpu.memory_space<vmem>>, vector<1x8x96xf32>
    %242 = vector.shape_cast %241 : vector<1x8x96xf32> to vector<8x96xf32>
    %243 = vector.extract_strided_slice %242 {offsets = [0, 0], sizes = [8, 64], strides = [1, 1]} : vector<8x96xf32> to vector<8x64xf32>
    %244 = vector.extract_strided_slice %239 {offsets = [0, 0], sizes = [8, 64], strides = [1, 1]} : vector<8x96xf32> to vector<8x64xf32>
    %245 = arith.addf %243, %244 : vector<8x64xf32>
    %cst_97 = arith.constant 5.000000e-01 : f32
    %246 = vector.broadcast %cst_97 : f32 to vector<8x64xf32>
    %247 = arith.mulf %246, %245 : vector<8x64xf32>
    %248 = math.tanh %247 : vector<8x64xf32>
    %cst_98 = arith.constant 1.000000e+00 : f32
    %249 = vector.broadcast %cst_98 : f32 to vector<8x64xf32>
    %250 = arith.addf %248, %249 : vector<8x64xf32>
    %cst_99 = arith.constant 5.000000e-01 : f32
    %251 = vector.broadcast %cst_99 : f32 to vector<8x64xf32>
    %252 = arith.mulf %251, %250 : vector<8x64xf32>
    %253 = vector.extract_strided_slice %252 {offsets = [0, 0], sizes = [8, 32], strides = [1, 1]} : vector<8x64xf32> to vector<8x32xf32>
    %254 = vector.extract_strided_slice %252 {offsets = [0, 32], sizes = [8, 32], strides = [1, 1]} : vector<8x64xf32> to vector<8x32xf32>
    %255 = vector.extract_strided_slice %242 {offsets = [0, 64], sizes = [8, 32], strides = [1, 1]} : vector<8x96xf32> to vector<8x32xf32>
    %256 = vector.extract_strided_slice %239 {offsets = [0, 64], sizes = [8, 32], strides = [1, 1]} : vector<8x96xf32> to vector<8x32xf32>
    %c0_100 = arith.constant 0 : index
    %c0_101 = arith.constant 0 : index
    %257 = vector.load %arg6[%c0_100, %c0_101] : memref<1x32xf32, #tpu.memory_space<vmem>>, vector<1x32xf32>
    %258 = vector.broadcast %257 : vector<1x32xf32> to vector<8x32xf32>
    %259 = arith.addf %256, %258 : vector<8x32xf32>
    %260 = arith.mulf %253, %259 : vector<8x32xf32>
    %261 = arith.addf %255, %260 : vector<8x32xf32>
    %262 = math.tanh %261 : vector<8x32xf32>
    %cst_102 = arith.constant 1.000000e+00 : f32
    %263 = vector.broadcast %cst_102 : f32 to vector<8x32xf32>
    %264 = arith.subf %263, %254 : vector<8x32xf32>
    %265 = arith.mulf %264, %262 : vector<8x32xf32>
    %266 = arith.mulf %254, %237 : vector<8x32xf32>
    %267 = arith.addf %265, %266 : vector<8x32xf32>
    %268 = arith.index_cast %c6_i32 : i32 to index
    %c0_103 = arith.constant 0 : index
    %c0_104 = arith.constant 0 : index
    %269 = vector.load %arg9[%268, %c0_103, %c0_104] : memref<8x8x32xf32, #tpu.memory_space<vmem>>, vector<1x8x32xf32>
    %270 = vector.shape_cast %269 : vector<1x8x32xf32> to vector<8x32xf32>
    %271 = vector.shape_cast %267 : vector<8x32xf32> to vector<1x8x32xf32>
    tpu.vector_store %arg9[%268, %c0_103, %c0_104], %271 {strides = array<i32>} : memref<8x8x32xf32, #tpu.memory_space<vmem>>, vector<1x8x32xf32>,
    %272 = arith.index_cast %c6_i32 : i32 to index
    %c0_105 = arith.constant 0 : index
    %c0_106 = arith.constant 0 : index
    %273 = vector.load %arg3[%272, %c0_105, %c0_106] : memref<8x8x1xf32, #tpu.memory_space<vmem>>, vector<1x8x1xf32>
    %274 = vector.shape_cast %273 : vector<1x8x1xf32> to vector<8x1xf32>
    %275 = vector.broadcast %274 : vector<8x1xf32> to vector<8x32xf32>
    %276 = arith.mulf %267, %275 : vector<8x32xf32>
    %c7_i32 = arith.constant 7 : i32
    %c0_107 = arith.constant 0 : index
    %c0_108 = arith.constant 0 : index
    %277 = vector.load %arg5[%c0_107, %c0_108] : memref<32x96xf32, #tpu.memory_space<vmem>>, vector<32x96xf32>
    %cst_109 = arith.constant dense<0.000000e+00> : vector<8x96xf32>
    %278 = tpu.matmul %276, %277, %cst_109 {dimension_numbers = #tpu.dot_dimension_numbers<[1], [0], [0], [1], [0, 0, 1, 1], [], []>} : vector<8x32xf32>, vector<32x96xf32>, vector<8x96xf32> -> vector<8x96xf32>
    %279 = arith.index_cast %c7_i32 : i32 to index
    %c0_110 = arith.constant 0 : index
    %c0_111 = arith.constant 0 : index
    %280 = vector.load %arg2[%279, %c0_110, %c0_111] : memref<8x8x96xf32, #tpu.memory_space<vmem>>, vector<1x8x96xf32>
    %281 = vector.shape_cast %280 : vector<1x8x96xf32> to vector<8x96xf32>
    %282 = vector.extract_strided_slice %281 {offsets = [0, 0], sizes = [8, 64], strides = [1, 1]} : vector<8x96xf32> to vector<8x64xf32>
    %283 = vector.extract_strided_slice %278 {offsets = [0, 0], sizes = [8, 64], strides = [1, 1]} : vector<8x96xf32> to vector<8x64xf32>
    %284 = arith.addf %282, %283 : vector<8x64xf32>
    %cst_112 = arith.constant 5.000000e-01 : f32
    %285 = vector.broadcast %cst_112 : f32 to vector<8x64xf32>
    %286 = arith.mulf %285, %284 : vector<8x64xf32>
    %287 = math.tanh %286 : vector<8x64xf32>
    %cst_113 = arith.constant 1.000000e+00 : f32
    %288 = vector.broadcast %cst_113 : f32 to vector<8x64xf32>
    %289 = arith.addf %287, %288 : vector<8x64xf32>
    %cst_114 = arith.constant 5.000000e-01 : f32
    %290 = vector.broadcast %cst_114 : f32 to vector<8x64xf32>
    %291 = arith.mulf %290, %289 : vector<8x64xf32>
    %292 = vector.extract_strided_slice %291 {offsets = [0, 0], sizes = [8, 32], strides = [1, 1]} : vector<8x64xf32> to vector<8x32xf32>
    %293 = vector.extract_strided_slice %291 {offsets = [0, 32], sizes = [8, 32], strides = [1, 1]} : vector<8x64xf32> to vector<8x32xf32>
    %294 = vector.extract_strided_slice %281 {offsets = [0, 64], sizes = [8, 32], strides = [1, 1]} : vector<8x96xf32> to vector<8x32xf32>
    %295 = vector.extract_strided_slice %278 {offsets = [0, 64], sizes = [8, 32], strides = [1, 1]} : vector<8x96xf32> to vector<8x32xf32>
    %c0_115 = arith.constant 0 : index
    %c0_116 = arith.constant 0 : index
    %296 = vector.load %arg6[%c0_115, %c0_116] : memref<1x32xf32, #tpu.memory_space<vmem>>, vector<1x32xf32>
    %297 = vector.broadcast %296 : vector<1x32xf32> to vector<8x32xf32>
    %298 = arith.addf %295, %297 : vector<8x32xf32>
    %299 = arith.mulf %292, %298 : vector<8x32xf32>
    %300 = arith.addf %294, %299 : vector<8x32xf32>
    %301 = math.tanh %300 : vector<8x32xf32>
    %cst_117 = arith.constant 1.000000e+00 : f32
    %302 = vector.broadcast %cst_117 : f32 to vector<8x32xf32>
    %303 = arith.subf %302, %293 : vector<8x32xf32>
    %304 = arith.mulf %303, %301 : vector<8x32xf32>
    %305 = arith.mulf %293, %276 : vector<8x32xf32>
    %306 = arith.addf %304, %305 : vector<8x32xf32>
    %307 = arith.index_cast %c7_i32 : i32 to index
    %c0_118 = arith.constant 0 : index
    %c0_119 = arith.constant 0 : index
    %308 = vector.load %arg9[%307, %c0_118, %c0_119] : memref<8x8x32xf32, #tpu.memory_space<vmem>>, vector<1x8x32xf32>
    %309 = vector.shape_cast %308 : vector<1x8x32xf32> to vector<8x32xf32>
    %310 = vector.shape_cast %306 : vector<8x32xf32> to vector<1x8x32xf32>
    tpu.vector_store %arg9[%307, %c0_118, %c0_119], %310 {strides = array<i32>} : memref<8x8x32xf32, #tpu.memory_space<vmem>>, vector<1x8x32xf32>,
    %311 = arith.index_cast %c7_i32 : i32 to index
    %c0_120 = arith.constant 0 : index
    %c0_121 = arith.constant 0 : index
    %312 = vector.load %arg3[%311, %c0_120, %c0_121] : memref<8x8x1xf32, #tpu.memory_space<vmem>>, vector<1x8x1xf32>
    %313 = vector.shape_cast %312 : vector<1x8x1xf32> to vector<8x1xf32>
    %314 = vector.broadcast %313 : vector<8x1xf32> to vector<8x32xf32>
    %315 = arith.mulf %306, %314 : vector<8x32xf32>
    %c8_i32 = arith.constant 8 : i32
    %c0_122 = arith.constant 0 : index
    %c0_123 = arith.constant 0 : index
    %316 = vector.load %arg11[%c0_122, %c0_123] : memref<8x32xf32, #tpu.memory_space<vmem>>, vector<8x32xf32>
    tpu.vector_store %arg11[%c0_122, %c0_123], %315 {strides = array<i32>} : memref<8x32xf32, #tpu.memory_space<vmem>>, vector<8x32xf32>,
    %c0_124 = arith.constant 0 : index
    %c0_125 = arith.constant 0 : index
    %317 = vector.load %arg7[%c0_124, %c0_125] : memref<32x8xf32, #tpu.memory_space<vmem>>, vector<32x8xf32>
    %c0_126 = arith.constant 0 : index
    %c0_127 = arith.constant 0 : index
    %318 = vector.load %arg8[%c0_126, %c0_127] : memref<1x8xf32, #tpu.memory_space<vmem>>, vector<1x8xf32>
    %c0_128 = arith.constant 0 : index
    %c0_129 = arith.constant 0 : index
    %c0_130 = arith.constant 0 : index
    %319 = vector.load %arg9[%c0_128, %c0_129, %c0_130] : memref<8x8x32xf32, #tpu.memory_space<vmem>>, vector<1x8x32xf32>
    %320 = vector.shape_cast %319 : vector<1x8x32xf32> to vector<8x32xf32>
    %cst_131 = arith.constant dense<0.000000e+00> : vector<8x8xf32>
    %321 = tpu.matmul %320, %317, %cst_131 {dimension_numbers = #tpu.dot_dimension_numbers<[1], [0], [0], [1], [0, 0, 1, 1], [], []>} : vector<8x32xf32>, vector<32x8xf32>, vector<8x8xf32> -> vector<8x8xf32>
    %322 = vector.broadcast %318 : vector<1x8xf32> to vector<8x8xf32>
    %323 = arith.addf %321, %322 : vector<8x8xf32>
    %c0_132 = arith.constant 0 : index
    %c0_133 = arith.constant 0 : index
    %c0_134 = arith.constant 0 : index
    %324 = vector.load %arg10[%c0_132, %c0_133, %c0_134] : memref<8x8x8xf32, #tpu.memory_space<vmem>>, vector<1x8x8xf32>
    %325 = vector.shape_cast %324 : vector<1x8x8xf32> to vector<8x8xf32>
    %326 = vector.shape_cast %323 : vector<8x8xf32> to vector<1x8x8xf32>
    tpu.vector_store %arg10[%c0_132, %c0_133, %c0_134], %326 {strides = array<i32>} : memref<8x8x8xf32, #tpu.memory_space<vmem>>, vector<1x8x8xf32>,
    %c1 = arith.constant 1 : index
    %c0_135 = arith.constant 0 : index
    %c0_136 = arith.constant 0 : index
    %327 = vector.load %arg9[%c1, %c0_135, %c0_136] : memref<8x8x32xf32, #tpu.memory_space<vmem>>, vector<1x8x32xf32>
    %328 = vector.shape_cast %327 : vector<1x8x32xf32> to vector<8x32xf32>
    %cst_137 = arith.constant dense<0.000000e+00> : vector<8x8xf32>
    %329 = tpu.matmul %328, %317, %cst_137 {dimension_numbers = #tpu.dot_dimension_numbers<[1], [0], [0], [1], [0, 0, 1, 1], [], []>} : vector<8x32xf32>, vector<32x8xf32>, vector<8x8xf32> -> vector<8x8xf32>
    %330 = vector.broadcast %318 : vector<1x8xf32> to vector<8x8xf32>
    %331 = arith.addf %329, %330 : vector<8x8xf32>
    %c1_138 = arith.constant 1 : index
    %c0_139 = arith.constant 0 : index
    %c0_140 = arith.constant 0 : index
    %332 = vector.load %arg10[%c1_138, %c0_139, %c0_140] : memref<8x8x8xf32, #tpu.memory_space<vmem>>, vector<1x8x8xf32>
    %333 = vector.shape_cast %332 : vector<1x8x8xf32> to vector<8x8xf32>
    %334 = vector.shape_cast %331 : vector<8x8xf32> to vector<1x8x8xf32>
    tpu.vector_store %arg10[%c1_138, %c0_139, %c0_140], %334 {strides = array<i32>} : memref<8x8x8xf32, #tpu.memory_space<vmem>>, vector<1x8x8xf32>,
    %c2 = arith.constant 2 : index
    %c0_141 = arith.constant 0 : index
    %c0_142 = arith.constant 0 : index
    %335 = vector.load %arg9[%c2, %c0_141, %c0_142] : memref<8x8x32xf32, #tpu.memory_space<vmem>>, vector<1x8x32xf32>
    %336 = vector.shape_cast %335 : vector<1x8x32xf32> to vector<8x32xf32>
    %cst_143 = arith.constant dense<0.000000e+00> : vector<8x8xf32>
    %337 = tpu.matmul %336, %317, %cst_143 {dimension_numbers = #tpu.dot_dimension_numbers<[1], [0], [0], [1], [0, 0, 1, 1], [], []>} : vector<8x32xf32>, vector<32x8xf32>, vector<8x8xf32> -> vector<8x8xf32>
    %338 = vector.broadcast %318 : vector<1x8xf32> to vector<8x8xf32>
    %339 = arith.addf %337, %338 : vector<8x8xf32>
    %c2_144 = arith.constant 2 : index
    %c0_145 = arith.constant 0 : index
    %c0_146 = arith.constant 0 : index
    %340 = vector.load %arg10[%c2_144, %c0_145, %c0_146] : memref<8x8x8xf32, #tpu.memory_space<vmem>>, vector<1x8x8xf32>
    %341 = vector.shape_cast %340 : vector<1x8x8xf32> to vector<8x8xf32>
    %342 = vector.shape_cast %339 : vector<8x8xf32> to vector<1x8x8xf32>
    tpu.vector_store %arg10[%c2_144, %c0_145, %c0_146], %342 {strides = array<i32>} : memref<8x8x8xf32, #tpu.memory_space<vmem>>, vector<1x8x8xf32>,
    %c3 = arith.constant 3 : index
    %c0_147 = arith.constant 0 : index
    %c0_148 = arith.constant 0 : index
    %343 = vector.load %arg9[%c3, %c0_147, %c0_148] : memref<8x8x32xf32, #tpu.memory_space<vmem>>, vector<1x8x32xf32>
    %344 = vector.shape_cast %343 : vector<1x8x32xf32> to vector<8x32xf32>
    %cst_149 = arith.constant dense<0.000000e+00> : vector<8x8xf32>
    %345 = tpu.matmul %344, %317, %cst_149 {dimension_numbers = #tpu.dot_dimension_numbers<[1], [0], [0], [1], [0, 0, 1, 1], [], []>} : vector<8x32xf32>, vector<32x8xf32>, vector<8x8xf32> -> vector<8x8xf32>
    %346 = vector.broadcast %318 : vector<1x8xf32> to vector<8x8xf32>
    %347 = arith.addf %345, %346 : vector<8x8xf32>
    %c3_150 = arith.constant 3 : index
    %c0_151 = arith.constant 0 : index
    %c0_152 = arith.constant 0 : index
    %348 = vector.load %arg10[%c3_150, %c0_151, %c0_152] : memref<8x8x8xf32, #tpu.memory_space<vmem>>, vector<1x8x8xf32>
    %349 = vector.shape_cast %348 : vector<1x8x8xf32> to vector<8x8xf32>
    %350 = vector.shape_cast %347 : vector<8x8xf32> to vector<1x8x8xf32>
    tpu.vector_store %arg10[%c3_150, %c0_151, %c0_152], %350 {strides = array<i32>} : memref<8x8x8xf32, #tpu.memory_space<vmem>>, vector<1x8x8xf32>,
    %c4 = arith.constant 4 : index
    %c0_153 = arith.constant 0 : index
    %c0_154 = arith.constant 0 : index
    %351 = vector.load %arg9[%c4, %c0_153, %c0_154] : memref<8x8x32xf32, #tpu.memory_space<vmem>>, vector<1x8x32xf32>
    %352 = vector.shape_cast %351 : vector<1x8x32xf32> to vector<8x32xf32>
    %cst_155 = arith.constant dense<0.000000e+00> : vector<8x8xf32>
    %353 = tpu.matmul %352, %317, %cst_155 {dimension_numbers = #tpu.dot_dimension_numbers<[1], [0], [0], [1], [0, 0, 1, 1], [], []>} : vector<8x32xf32>, vector<32x8xf32>, vector<8x8xf32> -> vector<8x8xf32>
    %354 = vector.broadcast %318 : vector<1x8xf32> to vector<8x8xf32>
    %355 = arith.addf %353, %354 : vector<8x8xf32>
    %c4_156 = arith.constant 4 : index
    %c0_157 = arith.constant 0 : index
    %c0_158 = arith.constant 0 : index
    %356 = vector.load %arg10[%c4_156, %c0_157, %c0_158] : memref<8x8x8xf32, #tpu.memory_space<vmem>>, vector<1x8x8xf32>
    %357 = vector.shape_cast %356 : vector<1x8x8xf32> to vector<8x8xf32>
    %358 = vector.shape_cast %355 : vector<8x8xf32> to vector<1x8x8xf32>
    tpu.vector_store %arg10[%c4_156, %c0_157, %c0_158], %358 {strides = array<i32>} : memref<8x8x8xf32, #tpu.memory_space<vmem>>, vector<1x8x8xf32>,
    %c5 = arith.constant 5 : index
    %c0_159 = arith.constant 0 : index
    %c0_160 = arith.constant 0 : index
    %359 = vector.load %arg9[%c5, %c0_159, %c0_160] : memref<8x8x32xf32, #tpu.memory_space<vmem>>, vector<1x8x32xf32>
    %360 = vector.shape_cast %359 : vector<1x8x32xf32> to vector<8x32xf32>
    %cst_161 = arith.constant dense<0.000000e+00> : vector<8x8xf32>
    %361 = tpu.matmul %360, %317, %cst_161 {dimension_numbers = #tpu.dot_dimension_numbers<[1], [0], [0], [1], [0, 0, 1, 1], [], []>} : vector<8x32xf32>, vector<32x8xf32>, vector<8x8xf32> -> vector<8x8xf32>
    %362 = vector.broadcast %318 : vector<1x8xf32> to vector<8x8xf32>
    %363 = arith.addf %361, %362 : vector<8x8xf32>
    %c5_162 = arith.constant 5 : index
    %c0_163 = arith.constant 0 : index
    %c0_164 = arith.constant 0 : index
    %364 = vector.load %arg10[%c5_162, %c0_163, %c0_164] : memref<8x8x8xf32, #tpu.memory_space<vmem>>, vector<1x8x8xf32>
    %365 = vector.shape_cast %364 : vector<1x8x8xf32> to vector<8x8xf32>
    %366 = vector.shape_cast %363 : vector<8x8xf32> to vector<1x8x8xf32>
    tpu.vector_store %arg10[%c5_162, %c0_163, %c0_164], %366 {strides = array<i32>} : memref<8x8x8xf32, #tpu.memory_space<vmem>>, vector<1x8x8xf32>,
    %c6 = arith.constant 6 : index
    %c0_165 = arith.constant 0 : index
    %c0_166 = arith.constant 0 : index
    %367 = vector.load %arg9[%c6, %c0_165, %c0_166] : memref<8x8x32xf32, #tpu.memory_space<vmem>>, vector<1x8x32xf32>
    %368 = vector.shape_cast %367 : vector<1x8x32xf32> to vector<8x32xf32>
    %cst_167 = arith.constant dense<0.000000e+00> : vector<8x8xf32>
    %369 = tpu.matmul %368, %317, %cst_167 {dimension_numbers = #tpu.dot_dimension_numbers<[1], [0], [0], [1], [0, 0, 1, 1], [], []>} : vector<8x32xf32>, vector<32x8xf32>, vector<8x8xf32> -> vector<8x8xf32>
    %370 = vector.broadcast %318 : vector<1x8xf32> to vector<8x8xf32>
    %371 = arith.addf %369, %370 : vector<8x8xf32>
    %c6_168 = arith.constant 6 : index
    %c0_169 = arith.constant 0 : index
    %c0_170 = arith.constant 0 : index
    %372 = vector.load %arg10[%c6_168, %c0_169, %c0_170] : memref<8x8x8xf32, #tpu.memory_space<vmem>>, vector<1x8x8xf32>
    %373 = vector.shape_cast %372 : vector<1x8x8xf32> to vector<8x8xf32>
    %374 = vector.shape_cast %371 : vector<8x8xf32> to vector<1x8x8xf32>
    tpu.vector_store %arg10[%c6_168, %c0_169, %c0_170], %374 {strides = array<i32>} : memref<8x8x8xf32, #tpu.memory_space<vmem>>, vector<1x8x8xf32>,
    %c7 = arith.constant 7 : index
    %c0_171 = arith.constant 0 : index
    %c0_172 = arith.constant 0 : index
    %375 = vector.load %arg9[%c7, %c0_171, %c0_172] : memref<8x8x32xf32, #tpu.memory_space<vmem>>, vector<1x8x32xf32>
    %376 = vector.shape_cast %375 : vector<1x8x32xf32> to vector<8x32xf32>
    %cst_173 = arith.constant dense<0.000000e+00> : vector<8x8xf32>
    %377 = tpu.matmul %376, %317, %cst_173 {dimension_numbers = #tpu.dot_dimension_numbers<[1], [0], [0], [1], [0, 0, 1, 1], [], []>} : vector<8x32xf32>, vector<32x8xf32>, vector<8x8xf32> -> vector<8x8xf32>
    %378 = vector.broadcast %318 : vector<1x8xf32> to vector<8x8xf32>
    %379 = arith.addf %377, %378 : vector<8x8xf32>
    %c7_174 = arith.constant 7 : index
    %c0_175 = arith.constant 0 : index
    %c0_176 = arith.constant 0 : index
    %380 = vector.load %arg10[%c7_174, %c0_175, %c0_176] : memref<8x8x8xf32, #tpu.memory_space<vmem>>, vector<1x8x8xf32>
    %381 = vector.shape_cast %380 : vector<1x8x8xf32> to vector<8x8xf32>
    %382 = vector.shape_cast %379 : vector<8x8xf32> to vector<1x8x8xf32>
    tpu.vector_store %arg10[%c7_174, %c0_175, %c0_176], %382 {strides = array<i32>} : memref<8x8x8xf32, #tpu.memory_space<vmem>>, vector<1x8x8xf32>,
    return
  }
  func.func @transform_0(%arg0: i32, %arg1: i32) -> (i32, i32, i32) {
    %c0_i32 = arith.constant 0 : i32
    %c0_i32_0 = arith.constant 0 : i32
    return %arg1, %arg0, %c0_i32 : i32, i32, i32
  }
  func.func @transform_1(%arg0: i32, %arg1: i32) -> (i32, i32, i32) {
    %c0_i32 = arith.constant 0 : i32
    %c0_i32_0 = arith.constant 0 : i32
    return %arg1, %arg0, %c0_i32 : i32, i32, i32
  }
  func.func @transform_2(%arg0: i32, %arg1: i32) -> (i32, i32) {
    %c0_i32 = arith.constant 0 : i32
    %c0_i32_0 = arith.constant 0 : i32
    return %arg0, %c0_i32 : i32, i32
  }
  func.func @transform_3(%arg0: i32, %arg1: i32) -> (i32, i32) {
    %c0_i32 = arith.constant 0 : i32
    %c0_i32_0 = arith.constant 0 : i32
    %c0_i32_1 = arith.constant 0 : i32
    return %c0_i32, %c0_i32_0 : i32, i32
  }
  func.func @transform_4(%arg0: i32, %arg1: i32) -> (i32, i32) {
    %c0_i32 = arith.constant 0 : i32
    %c0_i32_0 = arith.constant 0 : i32
    %c0_i32_1 = arith.constant 0 : i32
    return %c0_i32, %c0_i32_0 : i32, i32
  }
  func.func @transform_5(%arg0: i32, %arg1: i32) -> (i32, i32) {
    %c0_i32 = arith.constant 0 : i32
    %c0_i32_0 = arith.constant 0 : i32
    %c0_i32_1 = arith.constant 0 : i32
    return %c0_i32, %c0_i32_0 : i32, i32
  }
  func.func @transform_6(%arg0: i32, %arg1: i32) -> (i32, i32) {
    %c0_i32 = arith.constant 0 : i32
    %c0_i32_0 = arith.constant 0 : i32
    %c0_i32_1 = arith.constant 0 : i32
    return %c0_i32, %c0_i32_0 : i32, i32
  }
  func.func @transform_7(%arg0: i32, %arg1: i32) -> (i32, i32, i32) {
    %c0_i32 = arith.constant 0 : i32
    %c0_i32_0 = arith.constant 0 : i32
    return %arg1, %arg0, %c0_i32 : i32, i32, i32
  }
  func.func @transform_8(%arg0: i32, %arg1: i32) -> (i32, i32, i32) {
    %c0_i32 = arith.constant 0 : i32
    %c0_i32_0 = arith.constant 0 : i32
    return %arg1, %arg0, %c0_i32 : i32, i32, i32
  }
}

</mosaic_0001>

<bundles_post_ra>
// kernel: recurrent_head_forward.2
= control target key start
LH: loop header
LB: loop body
LE: loop exit
PB: predicated region body
PF: predicated region fallthrough
CT: control target
= control target key end

     0   :  { %vm33_vm0 = vcmask 261120   ;;  %vm163_vm1 = vcmask 785408   ;;  %s328_s1 = inlined_call_operand.vmem [shape: f32[32,96], index: 1, kind: input, shape index: {}]   ;;  %s329_s0 = inlined_call_operand.vmem [shape: f32[64,32], index: 0, kind: input, shape index: {}]   ;;  %s330_s2 = inlined_call_operand.vmem [shape: f32[1,96], index: 2, kind: input, shape index: {}]   ;;  %s331_s3 = inlined_call_operand.vmem [shape: f32[64,96], index: 3, kind: output, shape index: {}]  }
   0x1   :  { %v22_v0 = vld [vmem:[%s328_s1] sm:$0xff]  ;;  %v23_v1 = vld [vmem:[%s328_s1 + $0x8] sm:$0xff]  ;;  %v24_v2 = vld [vmem:[%s328_s1 + $0x10] sm:$0xff] }
   0x2   :  { %v217_v3 = vpack.c.bf16 %v23_v1, %v22_v0  ;;  %v25_v4 = vld [vmem:[%s328_s1 + $0x18] sm:$0xff]  ;;  %v14_v5 = vld [vmem:[%s329_s0] sm:$0xff]  ;;  %v15_v8 = vld [vmem:[%s329_s0 + $0x8] sm:$0xff] }
   0x3   :  { %v18_v6 = vld [vmem:[%s329_s0 + $0x20] sm:$0xff]  ;;  %v221_v7 = vpack.c.bf16 %v25_v4, %v24_v2  ;;  %205 = vmatprep.mubr.msk.f32.mxu0 %vm33_vm0, %v14_v5  ;;  %v19_v9 = vld [vmem:[%s329_s0 + $0x28] sm:$0xff]  ;;  %v16_v10 = vld [vmem:[%s329_s0 + $0x10] sm:$0xff] }
   0x4   :  { %211 = vmatprep.mubr.msk.f32.mxu1 %vm33_vm0, %v18_v6  ;;  %218 = vmatprep.subr.bf16.mxu0 %v217_v3  ;;  %v20_v11 = vld [vmem:[%s329_s0 + $0x30] sm:$0xff]  ;;  %v17_v12 = vld [vmem:[%s329_s0 + $0x18] sm:$0xff]  ;;  %v176_v14 = vld [vmem:[%s330_s2] ss:$0 sm:$0xff] }
   0x5   :  { %225 = vmatprep.subr.bf16.mxu1 %v217_v3  ;;  %220 = vmatpush3.bf16.msra.mxu0 %v217_v3  ;;  %v21_v13 = vld [vmem:[%s329_s0 + $0x38] sm:$0xff] }
   0x6   :  { %227 = vmatpush3.bf16.msra.mxu1 %v217_v3  ;;  %222 = vmatprep.subr.bf16.mxu0 %v221_v7 }
   0x7   :  { %226 = vmatprep.subr.bf16.mxu1 %v221_v7 }
   0x9   :  { %224 = vmatpush3.bf16.msra.mxu0 %v221_v7 }
   0xa   :  { %228 = vmatpush3.bf16.msra.mxu1 %v221_v7 }
   0xc   :  { %206 = vmatmul.mubr.msk.f32.vlgmr.msra.gmra.mrb[0].mxu0 %vm33_vm0, %v15_v8 }
   0xd   :  { %212 = vmatmul.mubr.msk.f32.vlgmr.msra.gmra.mrb[0].mxu1 %vm33_vm0, %v19_v9  ;;  %208 = vmatprep.mubr.msk.f32.mxu0 %vm33_vm0, %v16_v10 }
   0xe   :  { %214 = vmatprep.mubr.msk.f32.mxu1 %vm33_vm0, %v20_v11 }
  0x10   :  { %209 = vmatmul.mubr.msk.f32.gmra.mrb[2].mxu0 %vm33_vm0, %v17_v12 }
  0x11   :  { %215 = vmatmul.mubr.msk.f32.gmra.mrb[2].mxu1 %vm33_vm0, %v21_v13 }
  0xdf   :  { %v207_v15 = vpop.f32.mrb[0].mxu0 }
  0xe0   :  { %v213_v16 = vpop.f32.mrb[0].mxu1  ;;  %v130_v17 = vadd.f32 %v207_v15, %v176_v14  ;;  %v124_v19 = vpop.f32.mrb[1].mxu0 }
  0xe1   :  { %v150_v18 = vadd.f32 %v213_v16, %v176_v14  ;;  %v144_v20 = vpop.f32.mrb[1].mxu1  ;;  %v125_v21 = vadd.f32 %v176_v14, %v124_v19 }
  0xe2   :  { %v145_v22 = vadd.f32 %v176_v14, %v144_v20  ;;  %165 = vst.msk [vmem:[%s331_s3 + $0x8] sm:$0xff] %vm163_vm1, %v130_v17 }
  0xe3   :  { %169 = vst.msk [vmem:[%s331_s3 + $0x28] sm:$0xff] %vm163_vm1, %v150_v18  ;;  %164 = vst.msk [vmem:[%s331_s3] sm:$0xff] %vm163_vm1, %v125_v21  ;;  %v210_v23 = vpop.f32.mrb[2].mxu0 }
  0xe4   :  { %168 = vst.msk [vmem:[%s331_s3 + $0x20] sm:$0xff] %vm163_vm1, %v145_v22  ;;  %v216_v24 = vpop.f32.mrb[2].mxu1  ;;  %v140_v25 = vadd.f32 %v210_v23, %v176_v14  ;;  %v134_v27 = vpop.f32.mrb[3].mxu0 }
  0xe5   :  { %v160_v26 = vadd.f32 %v216_v24, %v176_v14  ;;  %v154_v28 = vpop.f32.mrb[3].mxu1  ;;  %v135_v29 = vadd.f32 %v176_v14, %v134_v27 }
  0xe6   :  { %v155_v30 = vadd.f32 %v176_v14, %v154_v28  ;;  %167 = vst.msk [vmem:[%s331_s3 + $0x18] sm:$0xff] %vm163_vm1, %v140_v25 }
  0xe7   :  { %171 = vst.msk [vmem:[%s331_s3 + $0x38] sm:$0xff] %vm163_vm1, %v160_v26  ;;  %166 = vst.msk [vmem:[%s331_s3 + $0x10] sm:$0xff] %vm163_vm1, %v135_v29 }
  0xe8   :  { %170 = vst.msk [vmem:[%s331_s3 + $0x30] sm:$0xff] %vm163_vm1, %v155_v30 }

// kernel: recurrent_head_forward.3
= control target key start
LH: loop header
LB: loop body
LE: loop exit
PB: predicated region body
PF: predicated region fallthrough
CT: control target
= control target key end

     0   :  { %vm33_vm0 = vcmask 261120   ;;  %v2152_v0 = vmov 0.0|0.0   ;;  %vm2153_vm1 = vmmov 0   ;;  %v2154_v4 = vmov 0.0   ;;  %s2155_s17 = smov 64   ;;  %s2157_s19 = smov 32   ;;  %s2581_s3 = inlined_call_operand.vmem [shape: f32[32,96], index: 3, kind: input, shape index: {}]   ;;  %s2582_s2 = inlined_call_operand.vmem [shape: f32[8,32], index: 2, kind: input, shape index: {}]   ;;  %s2583_s4 = inlined_call_operand.vmem [shape: f32[1,32], index: 4, kind: input, shape index: {}]   ;;  %s2584_s0 = inlined_call_operand.vmem [shape: f32[8,8,96], index: 0, kind: input, shape index: {}]   ;;  %s2585_s1 = inlined_call_operand.vmem [shape: f32[8,8,1], index: 1, kind: input, shape index: {}]   ;;  %s2586_s5 = inlined_call_operand.vmem [shape: f32[32,8], index: 5, kind: input, shape index: {}]   ;;  %s2587_s7 = inlined_call_operand.vmem [shape: f32[8,8,32], index: 7, kind: output, shape index: {0}]   ;;  %s2588_s6 = inlined_call_operand.vmem [shape: f32[1,8], index: 6, kind: input, shape index: {}]   ;;  %s2589_s8 = inlined_call_operand.vmem [shape: f32[8,8,8], index: 8, kind: output, shape index: {1}]  }
   0x1   :  { %2015 = vmatprep.subr.bf16.mxu0 %v2152_v0  ;;  %v36_v1 = vld [vmem:[%s2581_s3] sm:$0xff]  ;;  %v37_v2 = vld [vmem:[%s2581_s3 + $0x8] sm:$0xff]  ;;  %v38_v3 = vld [vmem:[%s2581_s3 + $0x10] sm:$0xff]  ;;  %1847 = vmatprep.mubr.msk.f32.mxu0 %vm2153_vm1, %v2154_v4  ;;  %v2156_v11 = vmov 0   ;;  %s2158_s20 = smov 96   ;;  %vm1157_vm2 = vcmask 64512  }
   0x2   :  { %v2216_v5 = vpack.c.bf16 %v37_v2, %v36_v1  ;;  %v39_v6 = vld [vmem:[%s2581_s3 + $0x18] sm:$0xff]  ;;  %v32_v7 = vld [vmem:[%s2582_s2] sm:$0xff]  ;;  %2021 = vmatprep.subr.bf16.mxu1 %v2152_v0  ;;  %1858 = vmatprep.mubr.msk.f32.mxu1 %vm2153_vm1, %v2154_v4  ;;  %v1702_v41 = vld [vmem:[%s2584_s0 + $0x8] sm:$0xff] }
   0x3   :  { %v2227_v8 = vld [vmem:[%s2583_s4] ss:$0 sm:$0xff]  ;;  %34 = vst.msk [vmem:[#allocation2] sm:$0xff] %vm33_vm0, %v32_v7  ;;  %v2236_v9 = vpack.c.bf16 %v39_v6, %v38_v3  ;;  %2118 = vset.pattern.permute.xlu1 %v2156_v11  ;;  %2119 = vset.pattern.permute.xlu0 %v2156_v11  ;;  %v1705_v45 = vld [vmem:[%s2585_s1 + $0x8] sm:$0xff]  ;;  %v1710_v2 = vld [vmem:[%s2585_s1 + $0x10] sm:$0xff] }
   0x4   :  { %126 = vrot.lane.b32.xlu0 %v2227_v8, %s2155_s17  ;;  %2017 = vmatpush3.bf16.msra.mxu0 %v2216_v5  ;;  %v114_v16 = vld [vmem:[%s2584_s0] sm:$0xff]  ;;  %v1707_v3 = vld [vmem:[%s2584_s0 + $0x10] sm:$0xff] }
   0x5   :  { %2023 = vmatpush3.bf16.msra.mxu1 %v2216_v5  ;;  %2018 = vmatprep.subr.bf16.mxu0 %v2152_v0  ;;  %v157_v24 = vld [vmem:[%s2585_s1] sm:$0xff] }
   0x6   :  { %2024 = vmatprep.subr.bf16.mxu1 %v2152_v0 }
   0x8   :  { %2020 = vmatpush3.bf16.msra.mxu0 %v2236_v9 }
   0x9   :  { %2026 = vmatpush3.bf16.msra.mxu1 %v2236_v9  ;;  %2027 = vmatprep.subr.bf16.mxu0 %v2152_v0 }
   0xa   :  { %2033 = vmatprep.subr.bf16.mxu1 %v2152_v0  ;;  %v35_v10 = vld [vmem:[#allocation2] sm:$0xff] }
   0xb   :  { %1848 = vmatmul.mubr.msk.f32.vlgmr.msra.gmra.mrb[0].mxu0 %vm33_vm0, %v35_v10 }
   0xc   :  { %2029 = vmatpush3.bf16.msra.mxu0 %v2216_v5  ;;  %1869 = vmatprep.mubr.msk.f32.mxu0 %vm2153_vm1, %v2154_v4 }
   0xd   :  { %2030 = vmatprep.subr.bf16.mxu0 %v2152_v0 }
  0x10   :  { %2032 = vmatpush3.bf16.msra.mxu0 %v2236_v9 }
  0x11   :  { %2039 = vmatprep.subr.bf16.mxu0 %v2152_v0 }
  0x76   :  { %v127_v12 = vpop.permute.xlu0 %126 }
  0xde   :  { %v110_v13 = vpop.f32.mrb[0].mxu0 }
  0xdf   :  { %v129_v14 = vadd.f32 %v127_v12, %v110_v13  ;;  %v1849_v15 = vpop.f32.mrb[1].mxu0  ;;  %v115_v17 = vadd.f32 %v114_v16, %v110_v13 }
  0xe1   :  { %131 = vrot.lane.b32.xlu0 %v129_v14, %s2155_s17  ;;  %v116_v18 = vmul.f32 0.5, %v115_v17 }
  0xe3   :  { %2120 = vtanh.f32 %v116_v18 }
  0xed   :  { %v2121_v19 = vpop.eup %2120 }
  0xee   :  { %v118_v20 = vadd.f32 1.0, %v2121_v19 }
  0xf0   :  { %v119_v21 = vmul.f32 0.5, %v118_v20 }
  0xf2   :  { %v141_v30 = vsub.f32 1.0, %v119_v21 }
 0x153   :  { %v132_v22 = vpop.permute.xlu0 %131 }
 0x154   :  { %v134_v23 = vmul.f32 %v132_v22, %v119_v21 }
 0x156   :  { %136 = vrot.lane.b32.xlu1 %v134_v23, %s2155_s17 }
 0x15a   :  { %160 = vperm.xlu1 %2118, %v157_v24  }
 0x15e   :  { %147 = vrot.lane.b32.xlu1 %v35_v10, %s2157_s19 }
 0x162   :  { %256 = vrot.lane.b32.xlu1 %v2227_v8, %s2155_s17 }
 0x1c8   :  { %v137_v25 = vpop.permute.xlu1 %136 }
 0x1c9   :  { %v139_v26 = vadd.f32 %v137_v25, %v114_v16 }
 0x1cb   :  { %2122 = vtanh.f32 %v139_v26 }
 0x1d5   :  { %v2123_v27 = vpop.eup %2122 }
 0x1d6   :  { %143 = vrot.lane.b32.xlu0 %v2123_v27, %s2158_s20 }
 0x1d9   :  { %v161_v28 = vpop.permute.xlu1 %160 }
 0x1dd   :  { %v148_v29 = vpop.permute.xlu1 %147 }
 0x1de   :  { %v150_v32 = vmul.f32 %v148_v29, %v119_v21 }
 0x1e1   :  { %v257_v37 = vpop.permute.xlu1 %256 }
 0x248   :  { %v144_v31 = vpop.permute.xlu0 %143 }
 0x249   :  { %v146_v33 = vmul.f32 %v144_v31, %v141_v30  ;;  %v1715_v30 = vld [vmem:[%s2585_s1 + $0x18] sm:$0xff] }
 0x24a   :  { %v1712_v31 = vld [vmem:[%s2584_s0 + $0x18] sm:$0xff] }
 0x24b   :  { %v2263_v34 = vadd.f32 %v150_v32, %v146_v33 }
 0x24d   :  { %v163_v35 = vmul.f32 %v161_v28, %v2263_v34 }
 0x24f   :  { %169 = vrot.lane.b32.xlu0 %v163_v35, %s2158_s20 }
 0x2c1   :  { %v170_v36 = vpop.permute.xlu0 %169 }
 0x2c2   :  { %1859 = vmatmul.mubr.msk.f32.vlgmr.msra.gmra.mrb[0].mxu1 %vm33_vm0, %v170_v36 }
 0x2c3   :  { %2035 = vmatpush3.bf16.msra.mxu1 %v2216_v5  ;;  %1880 = vmatprep.mubr.msk.f32.mxu1 %vm2153_vm1, %v2154_v4 }
 0x2c4   :  { %2036 = vmatprep.subr.bf16.mxu1 %v2152_v0 }
 0x2c7   :  { %2038 = vmatpush3.bf16.msra.mxu1 %v2236_v9 }
 0x2c8   :  { %2045 = vmatprep.subr.bf16.mxu1 %v2152_v0 }
 0x395   :  { %v239_v38 = vpop.f32.mrb[0].mxu1 }
 0x396   :  { %v259_v39 = vadd.f32 %v257_v37, %v239_v38  ;;  %v1860_v40 = vpop.f32.mrb[1].mxu1  ;;  %v245_v42 = vadd.f32 %v1702_v41, %v239_v38 }
 0x398   :  { %261 = vrot.lane.b32.xlu0 %v259_v39, %s2155_s17  ;;  %v246_v43 = vmul.f32 0.5, %v245_v42 }
 0x39a   :  { %2124 = vtanh.f32 %v246_v43 }
 0x39c   :  { %289 = vperm.xlu0 %2119, %v1705_v45  }
 0x3a0   :  { %385 = vrot.lane.b32.xlu0 %v2227_v8, %s2155_s17 }
 0x3a4   :  { %v2125_v44 = vpop.eup %2124 }
 0x3a5   :  { %v248_v46 = vadd.f32 1.0, %v2125_v44 }
 0x3a7   :  { %v249_v47 = vmul.f32 0.5, %v248_v46 }
 0x3a9   :  { %v271_v53 = vsub.f32 1.0, %v249_v47  ;;  %v277_v56 = vmul.f32 %v249_v47, %v163_v35 }
 0x40a   :  { %v262_v48 = vpop.permute.xlu0 %261 }
 0x40b   :  { %v264_v49 = vmul.f32 %v262_v48, %v249_v47 }
 0x40d   :  { %266 = vrot.lane.b32.xlu1 %v264_v49, %s2155_s17 }
 0x41b   :  { %v290_v57 = vpop.permute.xlu0 %289 }
 0x41f   :  { %v386_v61 = vpop.permute.xlu0 %385 }
 0x47f   :  { %v267_v50 = vpop.permute.xlu1 %266 }
 0x480   :  { %v269_v51 = vadd.f32 %v1702_v41, %v267_v50 }
 0x482   :  { %2126 = vtanh.f32 %v269_v51 }
 0x48c   :  { %v2127_v52 = vpop.eup %2126 }
 0x48d   :  { %273 = vrot.lane.b32.xlu1 %v2127_v52, %s2158_s20 }
 0x4ff   :  { %v274_v54 = vpop.permute.xlu1 %273 }
 0x500   :  { %v276_v55 = vmul.f32 %v274_v54, %v271_v53 }
 0x502   :  { %v2285_v58 = vadd.f32 %v277_v56, %v276_v55  ;;  %v1720_v55 = vld [vmem:[%s2585_s1 + $0x20] sm:$0xff] }
 0x503   :  { %v1717_v56 = vld [vmem:[%s2584_s0 + $0x20] sm:$0xff] }
 0x504   :  { %v292_v59 = vmul.f32 %v290_v57, %v2285_v58 }
 0x506   :  { %298 = vrot.lane.b32.xlu1 %v292_v59, %s2158_s20 }
 0x578   :  { %v299_v60 = vpop.permute.xlu1 %298 }
 0x579   :  { %1870 = vmatmul.mubr.msk.f32.vlgmr.msra.gmra.mrb[2].mxu0 %vm33_vm0, %v299_v60 }
 0x57a   :  { %2041 = vmatpush3.bf16.msra.mxu0 %v2216_v5  ;;  %1891 = vmatprep.mubr.msk.f32.mxu0 %vm2153_vm1, %v2154_v4 }
 0x57b   :  { %2042 = vmatprep.subr.bf16.mxu0 %v2152_v0 }
 0x57e   :  { %2044 = vmatpush3.bf16.msra.mxu0 %v2236_v9 }
 0x57f   :  { %2051 = vmatprep.subr.bf16.mxu0 %v2152_v0 }
 0x64c   :  { %v368_v62 = vpop.f32.mrb[2].mxu0 }
 0x64d   :  { %v388_v63 = vadd.f32 %v386_v61, %v368_v62  ;;  %v1871_v1 = vpop.f32.mrb[3].mxu0  ;;  %v374_v6 = vadd.f32 %v1707_v3, %v368_v62 }
 0x64f   :  { %390 = vrot.lane.b32.xlu1 %v388_v63, %s2155_s17  ;;  %v375_v7 = vmul.f32 0.5, %v374_v6 }
 0x651   :  { %2128 = vtanh.f32 %v375_v7 }
 0x653   :  { %418 = vperm.xlu1 %2118, %v1710_v2  }
 0x65b   :  { %v2129_v10 = vpop.eup %2128 }
 0x65c   :  { %v377_v11 = vadd.f32 1.0, %v2129_v10 }
 0x65e   :  { %v378_v12 = vmul.f32 0.5, %v377_v11 }
 0x660   :  { %v400_v18 = vsub.f32 1.0, %v378_v12  ;;  %v406_v20 = vmul.f32 %v378_v12, %v292_v59 }
 0x6c1   :  { %v391_v13 = vpop.permute.xlu1 %390 }
 0x6c2   :  { %v393_v14 = vmul.f32 %v391_v13, %v378_v12 }
 0x6c4   :  { %395 = vrot.lane.b32.xlu0 %v393_v14, %s2155_s17 }
 0x6d2   :  { %v419_v23 = vpop.permute.xlu1 %418 }
 0x736   :  { %v396_v15 = vpop.permute.xlu0 %395 }
 0x737   :  { %v398_v16 = vadd.f32 %v1707_v3, %v396_v15 }
 0x739   :  { %2130 = vtanh.f32 %v398_v16 }
 0x743   :  { %v2131_v17 = vpop.eup %2130 }
 0x744   :  { %402 = vrot.lane.b32.xlu0 %v2131_v17, %s2158_s20 }
 0x748   :  { %514 = vrot.lane.b32.xlu0 %v2227_v8, %s2155_s17 }
 0x7b6   :  { %v403_v19 = vpop.permute.xlu0 %402 }
 0x7b7   :  { %v405_v21 = vmul.f32 %v403_v19, %v400_v18 }
 0x7b9   :  { %v2307_v22 = vadd.f32 %v406_v20, %v405_v21  ;;  %v1725_v21 = vld [vmem:[%s2585_s1 + $0x28] sm:$0xff] }
 0x7ba   :  { %v515_v26 = vpop.permute.xlu0 %514 }
 0x7bb   :  { %v421_v24 = vmul.f32 %v419_v23, %v2307_v22 }
 0x7bd   :  { %427 = vrot.lane.b32.xlu1 %v421_v24, %s2158_s20 }
 0x82f   :  { %v428_v25 = vpop.permute.xlu1 %427 }
 0x830   :  { %1881 = vmatmul.mubr.msk.f32.vlgmr.msra.gmra.mrb[2].mxu1 %vm33_vm0, %v428_v25 }
 0x831   :  { %2047 = vmatpush3.bf16.msra.mxu1 %v2216_v5  ;;  %1902 = vmatprep.mubr.msk.f32.mxu1 %vm2153_vm1, %v2154_v4 }
 0x832   :  { %2048 = vmatprep.subr.bf16.mxu1 %v2152_v0 }
 0x835   :  { %2050 = vmatpush3.bf16.msra.mxu1 %v2236_v9 }
 0x836   :  { %2057 = vmatprep.subr.bf16.mxu1 %v2152_v0 }
 0x903   :  { %v497_v27 = vpop.f32.mrb[2].mxu1 }
 0x904   :  { %v517_v28 = vadd.f32 %v515_v26, %v497_v27  ;;  %v1882_v29 = vpop.f32.mrb[3].mxu1  ;;  %v503_v32 = vadd.f32 %v1712_v31, %v497_v27 }
 0x906   :  { %519 = vrot.lane.b32.xlu1 %v517_v28, %s2155_s17  ;;  %v504_v33 = vmul.f32 0.5, %v503_v32 }
 0x908   :  { %2132 = vtanh.f32 %v504_v33 }
 0x90a   :  { %547 = vperm.xlu1 %2118, %v1715_v30  }
 0x912   :  { %v2133_v35 = vpop.eup %2132 }
 0x913   :  { %v506_v36 = vadd.f32 1.0, %v2133_v35 }
 0x915   :  { %v507_v37 = vmul.f32 0.5, %v506_v36 }
 0x917   :  { %v529_v43 = vsub.f32 1.0, %v507_v37  ;;  %v535_v45 = vmul.f32 %v507_v37, %v421_v24 }
 0x978   :  { %v520_v38 = vpop.permute.xlu1 %519 }
 0x979   :  { %v522_v39 = vmul.f32 %v520_v38, %v507_v37 }
 0x97b   :  { %524 = vrot.lane.b32.xlu0 %v522_v39, %s2155_s17 }
 0x989   :  { %v548_v48 = vpop.permute.xlu1 %547 }
 0x9ed   :  { %v525_v40 = vpop.permute.xlu0 %524 }
 0x9ee   :  { %v527_v41 = vadd.f32 %v1712_v31, %v525_v40 }
 0x9f0   :  { %2134 = vtanh.f32 %v527_v41 }
 0x9fa   :  { %v2135_v42 = vpop.eup %2134 }
 0x9fb   :  { %531 = vrot.lane.b32.xlu0 %v2135_v42, %s2158_s20 }
 0x9ff   :  { %643 = vrot.lane.b32.xlu0 %v2227_v8, %s2155_s17 }
 0xa6d   :  { %v532_v44 = vpop.permute.xlu0 %531 }
 0xa6e   :  { %v534_v46 = vmul.f32 %v532_v44, %v529_v43 }
 0xa70   :  { %v2329_v47 = vadd.f32 %v535_v45, %v534_v46  ;;  %v1730_v45 = vld [vmem:[%s2585_s1 + $0x30] sm:$0xff] }
 0xa71   :  { %v644_v51 = vpop.permute.xlu0 %643  ;;  %v1727_v46 = vld [vmem:[%s2584_s0 + $0x30] sm:$0xff] }
 0xa72   :  { %v550_v49 = vmul.f32 %v548_v48, %v2329_v47 }
 0xa74   :  { %556 = vrot.lane.b32.xlu1 %v550_v49, %s2158_s20 }
 0xae6   :  { %v557_v50 = vpop.permute.xlu1 %556 }
 0xae7   :  { %1892 = vmatmul.mubr.msk.f32.vlgmr.msra.gmra.mrb[4].mxu0 %vm33_vm0, %v557_v50 }
 0xae8   :  { %2053 = vmatpush3.bf16.msra.mxu0 %v2216_v5  ;;  %1913 = vmatprep.mubr.msk.f32.mxu0 %vm2153_vm1, %v2154_v4 }
 0xae9   :  { %2054 = vmatprep.subr.bf16.mxu0 %v2152_v0 }
 0xaec   :  { %2056 = vmatpush3.bf16.msra.mxu0 %v2236_v9 }
 0xaed   :  { %2063 = vmatprep.subr.bf16.mxu0 %v2152_v0 }
 0xbba   :  { %v626_v52 = vpop.f32.mrb[4].mxu0 }
 0xbbb   :  { %v646_v53 = vadd.f32 %v644_v51, %v626_v52  ;;  %v1893_v54 = vpop.f32.mrb[5].mxu0  ;;  %v632_v57 = vadd.f32 %v1717_v56, %v626_v52 }
 0xbbd   :  { %648 = vrot.lane.b32.xlu1 %v646_v53, %s2155_s17  ;;  %v633_v59 = vmul.f32 0.5, %v632_v57 }
 0xbbf   :  { %2136 = vtanh.f32 %v633_v59 }
 0xbc1   :  { %676 = vperm.xlu1 %2118, %v1720_v55  }
 0xbc9   :  { %v2137_v60 = vpop.eup %2136 }
 0xbca   :  { %v635_v61 = vadd.f32 1.0, %v2137_v60 }
 0xbcc   :  { %v636_v62 = vmul.f32 0.5, %v635_v61 }
 0xbce   :  { %v658_v7 = vsub.f32 1.0, %v636_v62  ;;  %v664_v11 = vmul.f32 %v636_v62, %v550_v49 }
 0xc2f   :  { %v649_v63 = vpop.permute.xlu1 %648 }
 0xc30   :  { %v651_v1 = vmul.f32 %v649_v63, %v636_v62 }
 0xc32   :  { %653 = vrot.lane.b32.xlu0 %v651_v1, %s2155_s17 }
 0xc40   :  { %v677_v14 = vpop.permute.xlu1 %676 }
 0xca4   :  { %v654_v2 = vpop.permute.xlu0 %653 }
 0xca5   :  { %v656_v3 = vadd.f32 %v1717_v56, %v654_v2 }
 0xca7   :  { %2138 = vtanh.f32 %v656_v3 }
 0xcb1   :  { %v2139_v6 = vpop.eup %2138 }
 0xcb2   :  { %660 = vrot.lane.b32.xlu0 %v2139_v6, %s2158_s20 }
 0xcb6   :  { %772 = vrot.lane.b32.xlu0 %v2227_v8, %s2155_s17 }
 0xd24   :  { %v661_v10 = vpop.permute.xlu0 %660 }
 0xd25   :  { %v663_v12 = vmul.f32 %v661_v10, %v658_v7 }
 0xd27   :  { %v2351_v13 = vadd.f32 %v664_v11, %v663_v12  ;;  %v1732_v11 = vld [vmem:[%s2584_s0 + $0x38] sm:$0xff] }
 0xd28   :  { %v773_v17 = vpop.permute.xlu0 %772 }
 0xd29   :  { %v679_v15 = vmul.f32 %v677_v14, %v2351_v13 }
 0xd2b   :  { %685 = vrot.lane.b32.xlu1 %v679_v15, %s2158_s20 }
 0xd9d   :  { %v686_v16 = vpop.permute.xlu1 %685 }
 0xd9e   :  { %1903 = vmatmul.mubr.msk.f32.vlgmr.msra.gmra.mrb[4].mxu1 %vm33_vm0, %v686_v16  ;;  %v1073_v16 = vld [vmem:[%s2586_s5 + $0x8] sm:$0xff] }
 0xd9f   :  { %2059 = vmatpush3.bf16.msra.mxu1 %v2216_v5  ;;  %1924 = vmatprep.mubr.msk.f32.mxu1 %vm2153_vm1, %v2154_v4  ;;  %v1722_v5 = vld [vmem:[%s2584_s0 + $0x28] sm:$0xff] }
 0xda0   :  { %2060 = vmatprep.subr.bf16.mxu1 %v2152_v0 }
 0xda3   :  { %2062 = vmatpush3.bf16.msra.mxu1 %v2236_v9 }
 0xda4   :  { %2069 = vmatprep.subr.bf16.mxu1 %v2152_v0 }
 0xe71   :  { %v755_v18 = vpop.f32.mrb[4].mxu1 }
 0xe72   :  { %v775_v19 = vadd.f32 %v773_v17, %v755_v18  ;;  %v1904_v20 = vpop.f32.mrb[5].mxu1  ;;  %v761_v23 = vadd.f32 %v1722_v5, %v755_v18 }
 0xe73   :  { %v1074_v20 = vld [vmem:[%s2586_s5 + $0x10] sm:$0xff] }
 0xe74   :  { %777 = vrot.lane.b32.xlu1 %v775_v19, %s2155_s17  ;;  %v762_v24 = vmul.f32 0.5, %v761_v23 }
 0xe76   :  { %2140 = vtanh.f32 %v762_v24 }
 0xe78   :  { %805 = vperm.xlu1 %2118, %v1725_v21   ;;  %v1075_v21 = vld [vmem:[%s2586_s5 + $0x18] sm:$0xff] }
 0xe80   :  { %v2141_v9 = vpop.eup %2140 }
 0xe81   :  { %v764_v25 = vadd.f32 1.0, %v2141_v9 }
 0xe83   :  { %v765_v26 = vmul.f32 0.5, %v764_v25  ;;  %v1735_v25 = vld [vmem:[%s2585_s1 + $0x38] sm:$0xff] }
 0xe85   :  { %v787_v32 = vsub.f32 1.0, %v765_v26  ;;  %v793_v35 = vmul.f32 %v765_v26, %v679_v15  ;;  %v1072_v15 = vld [vmem:[%s2586_s5] sm:$0xff] }
 0xe86   :  { %v2408_v18 = vpack.c.bf16 %v1073_v16, %v1072_v15 }
 0xee6   :  { %v778_v27 = vpop.permute.xlu1 %777 }
 0xee7   :  { %v780_v28 = vmul.f32 %v778_v27, %v765_v26 }
 0xee9   :  { %782 = vrot.lane.b32.xlu0 %v780_v28, %s2155_s17 }
 0xef7   :  { %v806_v38 = vpop.permute.xlu1 %805 }
 0xf5b   :  { %v783_v29 = vpop.permute.xlu0 %782 }
 0xf5c   :  { %v785_v30 = vadd.f32 %v1722_v5, %v783_v29  ;;  %v2420_v5 = vpack.c.bf16 %v1075_v21, %v1074_v20 }
 0xf5e   :  { %2142 = vtanh.f32 %v785_v30 }
 0xf68   :  { %v2143_v31 = vpop.eup %2142 }
 0xf69   :  { %789 = vrot.lane.b32.xlu0 %v2143_v31, %s2158_s20 }
 0xf6d   :  { %901 = vrot.lane.b32.xlu0 %v2227_v8, %s2155_s17 }
 0xfdb   :  { %v790_v33 = vpop.permute.xlu0 %789 }
 0xfdc   :  { %v792_v36 = vmul.f32 %v790_v33, %v787_v32 }
 0xfde   :  { %v2373_v37 = vadd.f32 %v793_v35, %v792_v36 }
 0xfdf   :  { %v902_v41 = vpop.permute.xlu0 %901 }
 0xfe0   :  { %v808_v39 = vmul.f32 %v806_v38, %v2373_v37 }
 0xfe2   :  { %814 = vrot.lane.b32.xlu1 %v808_v39, %s2158_s20 }
0x1054   :  { %v815_v40 = vpop.permute.xlu1 %814 }
0x1055   :  { %1914 = vmatmul.mubr.msk.f32.vlgmr.msra.gmra.mrb[6].mxu0 %vm33_vm0, %v815_v40 }
0x1056   :  { %1935 = vmatprep.mubr.msk.f32.mxu0 %vm2153_vm1, %v2154_v4  ;;  %2065 = vmatpush3.bf16.msra.mxu0 %v2408_v18 }
0x1057   :  { %2066 = vmatprep.subr.bf16.mxu0 %v2152_v0 }
0x105a   :  { %2068 = vmatpush3.bf16.msra.mxu0 %v2420_v5 }
0x105b   :  { %2075 = vmatprep.subr.bf16.mxu0 %v2152_v0 }
0x1128   :  { %v884_v42 = vpop.f32.mrb[6].mxu0 }
0x1129   :  { %v904_v43 = vadd.f32 %v902_v41, %v884_v42  ;;  %v1915_v44 = vpop.f32.mrb[7].mxu0  ;;  %v890_v48 = vadd.f32 %v1727_v46, %v884_v42 }
0x112b   :  { %906 = vrot.lane.b32.xlu1 %v904_v43, %s2155_s17  ;;  %v891_v49 = vmul.f32 0.5, %v890_v48 }
0x112d   :  { %2144 = vtanh.f32 %v891_v49 }
0x112f   :  { %934 = vperm.xlu1 %2118, %v1730_v45  }
0x1137   :  { %v2145_v50 = vpop.eup %2144 }
0x1138   :  { %v893_v51 = vadd.f32 1.0, %v2145_v50 }
0x113a   :  { %v894_v52 = vmul.f32 0.5, %v893_v51 }
0x113c   :  { %v916_v59 = vsub.f32 1.0, %v894_v52  ;;  %v922_v61 = vmul.f32 %v894_v52, %v808_v39 }
0x119d   :  { %v907_v53 = vpop.permute.xlu1 %906 }
0x119e   :  { %v909_v54 = vmul.f32 %v907_v53, %v894_v52 }
0x11a0   :  { %911 = vrot.lane.b32.xlu0 %v909_v54, %s2155_s17 }
0x11ae   :  { %v935_v1 = vpop.permute.xlu1 %934 }
0x1212   :  { %v912_v55 = vpop.permute.xlu0 %911 }
0x1213   :  { %v914_v56 = vadd.f32 %v1727_v46, %v912_v55  ;;  %v1736_v46 = vld [vmem:[%s2588_s6] ss:$0 sm:$0xff] }
0x1215   :  { %2146 = vtanh.f32 %v914_v56 }
0x121f   :  { %v2147_v57 = vpop.eup %2146 }
0x1220   :  { %918 = vrot.lane.b32.xlu0 %v2147_v57, %s2158_s20 }
0x1224   :  { %1030 = vrot.lane.b32.xlu0 %v2227_v8, %s2155_s17 }
0x1292   :  { %v919_v60 = vpop.permute.xlu0 %918 }
0x1293   :  { %v921_v62 = vmul.f32 %v919_v60, %v916_v59 }
0x1295   :  { %v923_v63 = vadd.f32 %v922_v61, %v921_v62 }
0x1296   :  { %v1031_v6 = vpop.permute.xlu0 %1030 }
0x1297   :  { %v2391_v2 = vmul.f32 %v935_v1, %v923_v63 }
0x1299   :  { %943 = vrot.lane.b32.xlu1 %v2391_v2, %s2158_s20 }
0x130b   :  { %v944_v3 = vpop.permute.xlu1 %943 }
0x130c   :  { %1925 = vmatmul.mubr.msk.f32.vlgmr.msra.gmra.mrb[6].mxu1 %vm33_vm0, %v944_v3 }
0x130d   :  { %1946 = vmatprep.mubr.msk.f32.mxu1 %vm2153_vm1, %v2154_v4  ;;  %2071 = vmatpush3.bf16.msra.mxu1 %v2408_v18 }
0x130e   :  { %2072 = vmatprep.subr.bf16.mxu1 %v2152_v0 }
0x1311   :  { %2074 = vmatpush3.bf16.msra.mxu1 %v2420_v5 }
0x1312   :  { %2081 = vmatprep.subr.bf16.mxu1 %v2152_v0 }
0x13df   :  { %v1013_v7 = vpop.f32.mrb[6].mxu1 }
0x13e0   :  { %v1033_v8 = vadd.f32 %v1031_v6, %v1013_v7  ;;  %v1926_v10 = vpop.f32.mrb[7].mxu1  ;;  %v1019_v12 = vadd.f32 %v1732_v11, %v1013_v7 }
0x13e2   :  { %1035 = vrot.lane.b32.xlu1 %v1033_v8, %s2155_s17  ;;  %v1020_v14 = vmul.f32 0.5, %v1019_v12 }
0x13e4   :  { %2148 = vtanh.f32 %v1020_v14 }
0x13ee   :  { %v2149_v17 = vpop.eup %2148 }
0x13ef   :  { %v1022_v19 = vadd.f32 1.0, %v2149_v17 }
0x13f1   :  { %v1023_v23 = vmul.f32 0.5, %v1022_v19 }
0x13f3   :  { %v1045_v32 = vsub.f32 1.0, %v1023_v23  ;;  %v1051_v35 = vmul.f32 %v1023_v23, %v2391_v2 }
0x1454   :  { %v1036_v24 = vpop.permute.xlu1 %1035 }
0x1455   :  { %v1038_v9 = vmul.f32 %v1036_v24, %v1023_v23 }
0x1457   :  { %1040 = vrot.lane.b32.xlu0 %v1038_v9, %s2155_s17 }
0x145b   :  { %153 = vrot.lane.b32.xlu0 %v2263_v34, %s2158_s20 }
0x145f   :  { %409 = vrot.lane.b32.xlu0 %v2307_v22, %s2158_s20 }
0x1463   :  { %667 = vrot.lane.b32.xlu0 %v2351_v13, %s2158_s20 }
0x1467   :  { %925 = vrot.lane.b32.xlu0 %v923_v63, %s2158_s20 }
0x146b   :  { %1063 = vperm.xlu0 %2119, %v1735_v25  }
0x14c9   :  { %v1041_v26 = vpop.permute.xlu0 %1040 }
0x14ca   :  { %v1043_v27 = vadd.f32 %v1732_v11, %v1041_v26 }
0x14cc   :  { %2150 = vtanh.f32 %v1043_v27 }
0x14cd   :  { %v154_v28 = vpop.permute.xlu0 %153 }
0x14ce   :  { %156 = vst.msk [vmem:[%s2587_s7] sm:$0xff] %vm33_vm0, %v154_v28 }
0x14d1   :  { %v410_v34 = vpop.permute.xlu0 %409 }
0x14d2   :  { %1709 = vst.msk [vmem:[%s2587_s7 + $0x10] sm:$0xff] %vm33_vm0, %v410_v34 }
0x14d5   :  { %v668_v22 = vpop.permute.xlu0 %667  ;;  %v1077_v13 = vld [vmem:[%s2587_s7] sm:$0xff] }
0x14d6   :  { %v2151_v29 = vpop.eup %2150  ;;  %1719 = vst.msk [vmem:[%s2587_s7 + $0x20] sm:$0xff] %vm33_vm0, %v668_v22  ;;  %1936 = vmatmul.mubr.msk.f32.vlgmr.msra.gmra.mrb[8].mxu0 %vm33_vm0, %v1077_v13 }
0x14d7   :  { %2077 = vmatpush3.bf16.msra.mxu0 %v2408_v18  ;;  %1047 = vrot.lane.b32.xlu1 %v2151_v29, %s2158_s20 }
0x14d8   :  { %2078 = vmatprep.subr.bf16.mxu0 %v2152_v0  ;;  %1957 = vmatprep.mubr.msk.f32.mxu0 %vm2153_vm1, %v2154_v4 }
0x14d9   :  { %v926_v30 = vpop.permute.xlu0 %925  ;;  %v1741_v31 = vld [vmem:[%s2587_s7 + $0x10] sm:$0xff] }
0x14da   :  { %1729 = vst.msk [vmem:[%s2587_s7 + $0x30] sm:$0xff] %vm33_vm0, %v926_v30 }
0x14db   :  { %2080 = vmatpush3.bf16.msra.mxu0 %v2420_v5  ;;  %280 = vrot.lane.b32.xlu1 %v2285_v58, %s2158_s20 }
0x14dc   :  { %2087 = vmatprep.subr.bf16.mxu0 %v2152_v0 }
0x14dd   :  { %v1747_v58 = vld [vmem:[%s2587_s7 + $0x20] sm:$0xff] }
0x14de   :  { %1958 = vmatmul.mubr.msk.f32.vlgmr.msra.gmra.mrb[10].mxu0 %vm33_vm0, %v1741_v31 }
0x14df   :  { %2089 = vmatpush3.bf16.msra.mxu0 %v2408_v18  ;;  %538 = vrot.lane.b32.xlu1 %v2329_v47, %s2158_s20 }
0x14e0   :  { %2090 = vmatprep.subr.bf16.mxu0 %v2152_v0  ;;  %1979 = vmatprep.mubr.msk.f32.mxu0 %vm2153_vm1, %v2154_v4 }
0x14e1   :  { %v1753_v47 = vld [vmem:[%s2587_s7 + $0x30] sm:$0xff] }
0x14e3   :  { %2092 = vmatpush3.bf16.msra.mxu0 %v2420_v5  ;;  %796 = vrot.lane.b32.xlu1 %v2373_v37, %s2158_s20 }
0x14e4   :  { %2099 = vmatprep.subr.bf16.mxu0 %v2152_v0 }
0x14e6   :  { %1980 = vmatmul.mubr.msk.f32.vlgmr.msra.gmra.mrb[12].mxu0 %vm33_vm0, %v1747_v58 }
0x14e7   :  { %2101 = vmatpush3.bf16.msra.mxu0 %v2408_v18  ;;  %2001 = vmatprep.mubr.msk.f32.mxu0 %vm2153_vm1, %v2154_v4 }
0x14e8   :  { %2102 = vmatprep.subr.bf16.mxu0 %v2152_v0 }
0x14ea   :  { %v1064_v39 = vpop.permute.xlu0 %1063 }
0x14eb   :  { %2104 = vmatpush3.bf16.msra.mxu0 %v2420_v5 }
0x14ee   :  { %2002 = vmatmul.mubr.msk.f32.vlgmr.msra.gmra.mrb[14].mxu0 %vm33_vm0, %v1753_v47 }
0x1549   :  { %v1048_v33 = vpop.permute.xlu1 %1047 }
0x154a   :  { %v1050_v36 = vmul.f32 %v1048_v33, %v1045_v32 }
0x154c   :  { %v1052_v37 = vadd.f32 %v1051_v35, %v1050_v36 }
0x154d   :  { %v281_v38 = vpop.permute.xlu1 %280 }
0x154e   :  { %1704 = vst.msk [vmem:[%s2587_s7 + $0x8] sm:$0xff] %vm33_vm0, %v281_v38  ;;  %1054 = vrot.lane.b32.xlu1 %v1052_v37, %s2158_s20  ;;  %v1066_v40 = vmul.f32 %v1064_v39, %v1052_v37 }
0x1551   :  { %v539_v41 = vpop.permute.xlu1 %538 }
0x1552   :  { %1714 = vst.msk [vmem:[%s2587_s7 + $0x18] sm:$0xff] %vm33_vm0, %v539_v41  ;;  %1068 = vrot.lane.b32.xlu1 %v1066_v40, %s2158_s20 }
0x1555   :  { %v797_v42 = vpop.permute.xlu1 %796  ;;  %v1738_v43 = vld [vmem:[%s2587_s7 + $0x8] sm:$0xff] }
0x1556   :  { %1724 = vst.msk [vmem:[%s2587_s7 + $0x28] sm:$0xff] %vm33_vm0, %v797_v42  ;;  %1947 = vmatmul.mubr.msk.f32.vlgmr.msra.gmra.mrb[8].mxu1 %vm33_vm0, %v1738_v43 }
0x1557   :  { %2083 = vmatpush3.bf16.msra.mxu1 %v2408_v18  ;;  %1968 = vmatprep.mubr.msk.f32.mxu1 %vm2153_vm1, %v2154_v4 }
0x1558   :  { %2084 = vmatprep.subr.bf16.mxu1 %v2152_v0 }
0x1559   :  { %v1744_v44 = vld [vmem:[%s2587_s7 + $0x18] sm:$0xff] }
0x155b   :  { %2086 = vmatpush3.bf16.msra.mxu1 %v2420_v5 }
0x155c   :  { %2093 = vmatprep.subr.bf16.mxu1 %v2152_v0 }
0x155d   :  { %v1750_v45 = vld [vmem:[%s2587_s7 + $0x28] sm:$0xff] }
0x155e   :  { %1969 = vmatmul.mubr.msk.f32.vlgmr.msra.gmra.mrb[10].mxu1 %vm33_vm0, %v1744_v44 }
0x155f   :  { %2095 = vmatpush3.bf16.msra.mxu1 %v2408_v18  ;;  %1990 = vmatprep.mubr.msk.f32.mxu1 %vm2153_vm1, %v2154_v4 }
0x1560   :  { %2096 = vmatprep.subr.bf16.mxu1 %v2152_v0 }
0x1563   :  { %2098 = vmatpush3.bf16.msra.mxu1 %v2420_v5 }
0x1564   :  { %2105 = vmatprep.subr.bf16.mxu1 %v2152_v0 }
0x1566   :  { %1991 = vmatmul.mubr.msk.f32.vlgmr.msra.gmra.mrb[12].mxu1 %vm33_vm0, %v1750_v45 }
0x1567   :  { %2107 = vmatpush3.bf16.msra.mxu1 %v2408_v18  ;;  %2012 = vmatprep.mubr.msk.f32.mxu1 %vm2153_vm1, %v2154_v4 }
0x1568   :  { %2108 = vmatprep.subr.bf16.mxu1 %v2152_v0 }
0x156b   :  { %2110 = vmatpush3.bf16.msra.mxu1 %v2420_v5 }
0x15a9   :  { %v1153_v48 = vpop.f32.mrb[8].mxu0 }
0x15aa   :  { %v1154_v49 = vadd.f32 %v1736_v46, %v1153_v48  ;;  %v1937_v50 = vpop.f32.mrb[9].mxu0 }
0x15ac   :  { %1158 = vst.msk [vmem:[%s2589_s8] sm:$0xff] %vm1157_vm2, %v1154_v49 }
0x15b1   :  { %v1305_v51 = vpop.f32.mrb[10].mxu0 }
0x15b2   :  { %v1306_v52 = vadd.f32 %v1736_v46, %v1305_v51  ;;  %v1959_v4 = vpop.f32.mrb[11].mxu0 }
0x15b4   :  { %1743 = vst.msk [vmem:[%s2589_s8 + $0x10] sm:$0xff] %vm1157_vm2, %v1306_v52 }
0x15b9   :  { %v1457_v0 = vpop.f32.mrb[12].mxu0 }
0x15ba   :  { %v1458_v53 = vadd.f32 %v1736_v46, %v1457_v0  ;;  %v1981_v54 = vpop.f32.mrb[13].mxu0 }
0x15bc   :  { %1749 = vst.msk [vmem:[%s2589_s8 + $0x20] sm:$0xff] %vm1157_vm2, %v1458_v53 }
0x15c0   :  { %v1055_v55 = vpop.permute.xlu1 %1054 }
0x15c1   :  { %1734 = vst.msk [vmem:[%s2587_s7 + $0x38] sm:$0xff] %vm33_vm0, %v1055_v55  ;;  %v1609_v56 = vpop.f32.mrb[14].mxu0 }
0x15c2   :  { %v1610_v57 = vadd.f32 %v1736_v46, %v1609_v56  ;;  %v2003_v59 = vpop.f32.mrb[15].mxu0 }
0x15c4   :  { %1755 = vst.msk [vmem:[%s2589_s8 + $0x30] sm:$0xff] %vm1157_vm2, %v1610_v57  ;;  %v1069_v60 = vpop.permute.xlu1 %1068 }
0x15c5   :  { %1071 = vst.msk [vmem:[#allocation2] sm:$0xff] %vm33_vm0, %v1069_v60 }
0x15c8   :  { %v1756_v61 = vld [vmem:[%s2587_s7 + $0x38] sm:$0xff] }
0x15c9   :  { %2013 = vmatmul.mubr.msk.f32.vlgmr.msra.gmra.mrb[14].mxu1 %vm33_vm0, %v1756_v61 }
0x1629   :  { %v1229_v62 = vpop.f32.mrb[8].mxu1 }
0x162a   :  { %v1230_v63 = vadd.f32 %v1736_v46, %v1229_v62  ;;  %v1948_v1 = vpop.f32.mrb[9].mxu1 }
0x162c   :  { %1740 = vst.msk [vmem:[%s2589_s8 + $0x8] sm:$0xff] %vm1157_vm2, %v1230_v63 }
0x1631   :  { %v1381_v2 = vpop.f32.mrb[10].mxu1 }
0x1632   :  { %v1382_v3 = vadd.f32 %v1736_v46, %v1381_v2  ;;  %v1970_v6 = vpop.f32.mrb[11].mxu1 }
0x1634   :  { %1746 = vst.msk [vmem:[%s2589_s8 + $0x18] sm:$0xff] %vm1157_vm2, %v1382_v3 }
0x1639   :  { %v1533_v7 = vpop.f32.mrb[12].mxu1 }
0x163a   :  { %v1534_v8 = vadd.f32 %v1736_v46, %v1533_v7  ;;  %v1992_v10 = vpop.f32.mrb[13].mxu1 }
0x163c   :  { %1752 = vst.msk [vmem:[%s2589_s8 + $0x28] sm:$0xff] %vm1157_vm2, %v1534_v8 }
0x169c   :  { %v1685_v11 = vpop.f32.mrb[14].mxu1 }
0x169d   :  { %v1686_v12 = vadd.f32 %v1736_v46, %v1685_v11  ;;  %v2014_v14 = vpop.f32.mrb[15].mxu1 }
0x169f   :  { %1758 = vst.msk [vmem:[%s2589_s8 + $0x38] sm:$0xff] %vm1157_vm2, %v1686_v12 }

</bundles_post_ra>
